<compile_context>
chip_gen: v5e
topology: v5e:2x2
jax: 0.10.0
libtpu: 0.0.40
codegen_flags: <defaults>
</compile_context>

<pallas_src>
import functools

import jax
import jax.numpy as jnp
from jax.experimental import pallas as pl
from jax.experimental.pallas import tpu as pltpu


# ---------------------------------------------------------------------------
# Kernel 1: fused conv1(4x4,s2,p1)+ReLU -> conv2(3x3,s1,p1)+bias
#           + per-image BN partial sums, channels-first output.  One image/step.
# ---------------------------------------------------------------------------
def _fused_conv_bn_stats_kernel(xs_ref, mask_ref, w1_ref, b1_ref, w2_ref, b2_ref,
                                y_ref, psum_ref, psq_ref, h1_ref,
                                *, ho, P, cout):
    """Shapes (batch dim squeezed):
      xs_ref  : ((ho+2)*P, 4*Cin)   space-to-depth padded input, row pitch P
      mask_ref: (ho*P, 1) f32       1.0 for valid columns (< wo), 0.0 for pad columns
      w1_ref  : (4, 4*Cin, Cout)    conv1 taps (tap = 2*bi + bj)
      w2_ref  : (9, Cout, Cout)     conv2 taps (tap = 3*ki + kj)
      b1_ref, b2_ref : (1, Cout)
      y_ref   : (Cout, ho*P)        conv2 output, channels-first, pitch P (lane-dense)
      psum_ref, psq_ref : (1, Cout) per-image BN partials (valid positions only)
      h1_ref  : ((ho+4)*P, Cout)    VMEM scratch for conv1+ReLU act with zero halo
    """
    f32 = jnp.float32
    hp = ho * P

    # Zero only the halo / overrun rows conv2 reads but conv1 never writes
    # (the interior [2P, (ho+2)*P) is fully overwritten below every grid step).
    h1_ref[pl.ds(0, 2 * P), :] = jnp.zeros((2 * P, cout), h1_ref.dtype)
    h1_ref[pl.ds((ho + 2) * P, 2 * P), :] = jnp.zeros((2 * P, cout), h1_ref.dtype)

    m = mask_ref[...]                  # (hp, 1) f32
    b1 = b1_ref[...]                   # (1, cout) f32
    b2 = b2_ref[...]

    # ---- conv1: 4x4 stride-2 pad-1 == 4 taps of a 2x2 stride-1 conv on the
    #      space-to-depth input; each tap is ONE (hp, 4Cin) @ (4Cin, Cout) matmul.
    acc1 = jnp.zeros((hp, cout), f32)
    for bi in range(2):
        for bj in range(2):
            slab = xs_ref[pl.ds(bi * P + bj, hp), :]
            acc1 += jnp.dot(slab, w1_ref[2 * bi + bj], preferred_element_type=f32)
    # bias + ReLU + mask pad columns to zero, then ONE aligned bulk store
    # (interior row `oh` lands at flat rows (oh+2)*P .. (oh+2)*P + wo-1).
    h1_ref[pl.ds(2 * P, hp), :] = (jnp.maximum(acc1 + b1, 0.0) * m).astype(h1_ref.dtype)

    # ---- conv2: 3x3 stride-1 pad-1 -> 9 whole-image matmuls on the VMEM-resident
    #      activation (zero halo provides the padding).
    acc2 = jnp.zeros((hp, cout), f32)
    for ki in range(3):
        for kj in range(3):
            slab = h1_ref[pl.ds((ki + 1) * P + kj - 1, hp), :]
            acc2 += jnp.dot(slab, w2_ref[3 * ki + kj], preferred_element_type=f32)
    yb = acc2 + b2                     # (hp, cout) f32; pad columns hold garbage
    ym = yb * m                        # mask pad columns -> exact zeros

    # ---- per-image BN partial sums while the result is still on-chip
    psum_ref[...] = jnp.sum(ym, axis=0, keepdims=True)
    psq_ref[...] = jnp.sum(ym * ym, axis=0, keepdims=True)

    # ---- channels-first, lane-dense store (spatial on the 128 lanes)
    y_ref[...] = ym.T


# ---------------------------------------------------------------------------
# Kernel 2: BatchNorm normalize (fused affine) + ReLU, drops pad columns,
#           writes the final NCHW output.
# ---------------------------------------------------------------------------
def _bn_relu_kernel(y_ref, a_ref, b_ref, o_ref, *, wo):
    """y_ref: (Cout, TR, P) channels-first tile with pad columns; o_ref: (Cout, TR, wo)."""
    y = y_ref[...][:, :, :wo]
    o_ref[...] = jnp.maximum(y * a_ref[...] + b_ref[...], 0.0)


# ---------------------------------------------------------------------------
# Wrapper
# ---------------------------------------------------------------------------
def _pick_row_tile(ho, cout, P, wo, max_bytes=4 << 20):
    """Rows per tile for the BN pass: largest multiple-of-8 divisor of ho that fits."""
    per_row = cout * (P + wo) * 4 * 2          # in + out, double-buffered
    cap = max(1, max_bytes // max(per_row, 1))
    if ho <= cap:
        return ho
    best = None
    for t in range(8, ho + 1, 8):
        if ho % t == 0 and t <= cap:
            best = t
    return best if best is not None else ho


def downsample_x2_forward(x, params, use_bn=True, eps=1e-5,
                          compute_dtype=jnp.float32):
    """x: (N, Cin, H, W) f32 (PyTorch NCHW). Returns (N, Cout, H//2, W//2) f32."""
    w1, b1, w2, b2, gamma, beta = params
    n, cin, h, w = x.shape
    cout = w1.shape[0]
    assert h % 2 == 0 and w % 2 == 0, "spatial dims must be even"
    ho, wo = h // 2, w // 2
    hs, ws = ho + 1, wo + 1            # padded space-to-depth spatial extents
    c1k = 4 * cin
    P = -(-ws // 8) * 8                # padded row pitch (multiple of 8, >= wo+1)
    hp = ho * P
    xr = (ho + 2) * P                  # s2d rows incl. pad rows for slab overrun
    h1r = (ho + 4) * P                 # conv1-activation scratch rows (halo + overrun)

    # ---- input prep (XLA, one pass over the small input tensor) -----------------------
    # NCHW -> NHWC -> pad 1px -> space-to-depth(2) with channel order (si, sj, ci)
    # -> pad row pitch to P -> flatten rows -> pad extra rows.
    x_nhwc = jnp.transpose(x, (0, 2, 3, 1)).astype(jnp.float32)
    xp = jnp.pad(x_nhwc, ((0, 0), (1, 1), (1, 1), (0, 0)))
    xs = (xp.reshape(n, hs, 2, ws, 2, cin)
            .transpose(0, 1, 3, 2, 4, 5)
            .reshape(n, hs, ws, c1k))
    xs = jnp.pad(xs, ((0, 0), (0, 0), (0, P - ws), (0, 0)))
    xs = xs.reshape(n, hs * P, c1k)
    xs = jnp.pad(xs, ((0, 0), (0, xr - hs * P), (0, 0))).astype(compute_dtype)

    # ---- weight / bias repack (tiny) ---------------------------------------------------
    # conv1 (Cout,Cin,4,4) -> (tap=2*bi+bj, channel=si*2Cin+sj*Cin+ci, Cout)
    w1m = (w1.reshape(cout, cin, 2, 2, 2, 2)
             .transpose(2, 4, 3, 5, 1, 0)
             .reshape(4, c1k, cout)).astype(compute_dtype)
    # conv2 (Cout,Cout,3,3) -> (tap=3*ki+kj, Cin, Cout)
    w2m = w2.transpose(2, 3, 1, 0).reshape(9, cout, cout).astype(compute_dtype)
    b1r = b1.reshape(1, cout).astype(jnp.float32)
    b2r = b2.reshape(1, cout).astype(jnp.float32)

    # 0/1 column-validity mask for pitch-P rows (1.0 where column < wo)
    colmask = jnp.tile(jnp.arange(P) < wo, ho).astype(jnp.float32).reshape(hp, 1)

    # explicit scoped-VMEM budget (double-buffered blocks + scratch + weights + slack)
    bpe = jnp.dtype(compute_dtype).itemsize
    need = (2 * xr * c1k * bpe + 2 * cout * hp * 4 + h1r * cout * bpe
            + (4 * c1k * cout + 9 * cout * cout) * bpe + hp * 4 + (1 << 20))
    vmem_limit = int(min(max(2 * need, 32 * 2**20), 64 * 2**20))

    # ---- fused conv1+ReLU+conv2 + BN partials (one Pallas kernel, grid over batch) -----
    y_cf, psum, psq = pl.pallas_call(
        functools.partial(_fused_conv_bn_stats_kernel, ho=ho, P=P, cout=cout),
        out_shape=(jax.ShapeDtypeStruct((n, cout, hp), jnp.float32),
                   jax.ShapeDtypeStruct((n, 1, cout), jnp.float32),
                   jax.ShapeDtypeStruct((n, 1, cout), jnp.float32)),
        grid=(n,),
        in_specs=[
            pl.BlockSpec((None, xr, c1k), lambda i: (i, 0, 0)),
            pl.BlockSpec((hp, 1), lambda i: (0, 0)),
            pl.BlockSpec((4, c1k, cout), lambda i: (0, 0, 0)),
            pl.BlockSpec((1, cout), lambda i: (0, 0)),
            pl.BlockSpec((9, cout, cout), lambda i: (0, 0, 0)),
            pl.BlockSpec((1, cout), lambda i: (0, 0)),
        ],
        out_specs=(pl.BlockSpec((None, cout, hp), lambda i: (i, 0, 0)),
                   pl.BlockSpec((None, 1, cout), lambda i: (i, 0, 0)),
                   pl.BlockSpec((None, 1, cout), lambda i: (i, 0, 0))),
        scratch_shapes=[pltpu.VMEM((h1r, cout), compute_dtype)],
        compiler_params=pltpu.CompilerParams(
            dimension_semantics=("parallel",),
            vmem_limit_bytes=vmem_limit),
    )(xs, colmask, w1m, b1r, w2m, b2r)

    # ---- finalize BN affine in XLA (cout-sized math) -----------------------------------
    if use_bn:
        cnt = float(n * ho * wo)
        mean = jnp.sum(psum, axis=(0, 1)) / cnt
        # NOTE: single-pass E[x^2]-mean^2 variance (f32); matches PyTorch batch-stat
        # normalization at these scales but can cancel for large-mean activations.
        var = jnp.sum(psq, axis=(0, 1)) / cnt - mean * mean
        a_vec = gamma.astype(jnp.float32) * jax.lax.rsqrt(var + eps)
        b_vec = beta.astype(jnp.float32) - mean * a_vec
    else:
        a_vec = jnp.ones((cout,), jnp.float32)
        b_vec = jnp.zeros((cout,), jnp.float32)
    a3 = a_vec.reshape(cout, 1, 1)
    b3 = b_vec.reshape(cout, 1, 1)

    # free (contiguous) reshape: expose the (rows, pitch) structure for the BN pass
    y4 = y_cf.reshape(n, cout, ho, P)
    tr = _pick_row_tile(ho, cout, P, wo)

    out = pl.pallas_call(
        functools.partial(_bn_relu_kernel, wo=wo),
        out_shape=jax.ShapeDtypeStruct((n, cout, ho, wo), jnp.float32),
        grid=(n, ho // tr),
        in_specs=[
            pl.BlockSpec((None, cout, tr, P), lambda i, j: (i, 0, j, 0)),
            pl.BlockSpec((cout, 1, 1), lambda i, j: (0, 0, 0)),
            pl.BlockSpec((cout, 1, 1), lambda i, j: (0, 0, 0)),
        ],
        out_specs=pl.BlockSpec((None, cout, tr, wo), lambda i, j: (i, 0, j, 0)),
        compiler_params=pltpu.CompilerParams(
            dimension_semantics=("parallel", "parallel")),
    )(y4, a3, b3)

    return out                                            # NCHW, no trailing transpose


# ---------------------------------------------------------------------------
# Pure-JAX reference (correctness check)
# ---------------------------------------------------------------------------
def _reference(x, params, use_bn=True, eps=1e-5):
    w1, b1, w2, b2, gamma, beta = params
    dn = ("NCHW", "OIHW", "NCHW")
    y = jax.lax.conv_general_dilated(x, w1, (2, 2), [(1, 1), (1, 1)], dimension_numbers=dn)
    y = jnp.maximum(y + b1.reshape(1, -1, 1, 1), 0.0)
    y = jax.lax.conv_general_dilated(y, w2, (1, 1), [(1, 1), (1, 1)], dimension_numbers=dn)
    y = y + b2.reshape(1, -1, 1, 1)
    if use_bn:
        mean = jnp.mean(y, axis=(0, 2, 3), keepdims=True)
        var = jnp.mean((y - mean) ** 2, axis=(0, 2, 3), keepdims=True)
        y = (y - mean) * jax.lax.rsqrt(var + eps)
        y = y * gamma.reshape(1, -1, 1, 1) + beta.reshape(1, -1, 1, 1)
    return jnp.maximum(y, 0.0)


# ---------------------------------------------------------------------------
if __name__ == "__main__":
    in_channels, out_channels = 4, 8
    N, H, W = 2, 16, 16

    key = jax.random.PRNGKey(0)
    kx, k1, k2, k3, k4 = jax.random.split(key, 5)

    x = jax.random.normal(kx, (N, in_channels, H, W), jnp.float32)
    w1 = jax.random.normal(k1, (out_channels, in_channels, 4, 4), jnp.float32) * 0.1
    b1 = jax.random.normal(k2, (out_channels,), jnp.float32) * 0.1
    w2 = jax.random.normal(k3, (out_channels, out_channels, 3, 3), jnp.float32) * 0.1
    b2 = jax.random.normal(k4, (out_channels,), jnp.float32) * 0.1
    gamma = jnp.ones((out_channels,), jnp.float32)   # PyTorch BN default affine init
    beta = jnp.zeros((out_channels,), jnp.float32)
    params = (w1, b1, w2, b2, gamma, beta)

    ref = jax.block_until_ready(_reference(x, params, use_bn=True))

    # f32 path (tight accuracy check)
    fwd32 = jax.jit(lambda xx, pp: downsample_x2_forward(
        xx, pp, use_bn=True, compute_dtype=jnp.float32))
    out32 = jax.block_until_ready(fwd32(x, params))
    assert out32.shape == (N, out_channels, H // 2, W // 2), out32.shape
    err32 = float(jnp.max(jnp.abs(out32 - ref)))
    assert err32 < 2e-3, err32

    # bf16 matmul-operand path (v6e/v7x MXU-native), f32 accumulation
    fwd16 = jax.jit(lambda xx, pp: downsample_x2_forward(
        xx, pp, use_bn=True, compute_dtype=jnp.bfloat16))
    out16 = jax.block_until_ready(fwd16(x, params))
    err16 = float(jnp.max(jnp.abs(out16 - ref)))
    assert err16 < 1.5e-1, err16

    print("KERNEL_OK")
</pallas_src>

<mosaic_0001>
module attributes {stable_mosaic.version = 11 : i64} {
  func.func @_fused_conv_bn_stats_kernel(%arg0: i32, %arg1: memref<1x160x16xf32, #tpu.memory_space<vmem>>, %arg2: memref<128x1xf32, #tpu.memory_space<vmem>>, %arg3: memref<4x16x8xf32, #tpu.memory_space<vmem>>, %arg4: memref<1x8xf32, #tpu.memory_space<vmem>>, %arg5: memref<9x8x8xf32, #tpu.memory_space<vmem>>, %arg6: memref<1x8xf32, #tpu.memory_space<vmem>>, %arg7: memref<1x8x128xf32, #tpu.memory_space<vmem>>, %arg8: memref<1x1x8xf32, #tpu.memory_space<vmem>>, %arg9: memref<1x1x8xf32, #tpu.memory_space<vmem>>, %arg10: memref<192x8xf32, #tpu.memory_space<vmem>>) attributes {dimension_semantics = [#tpu.dimension_semantics<parallel>], iteration_bounds = array<i64: 2>, scalar_prefetch = 0 : i64, scratch_operands = 1 : i64, tpu.core_type = #tpu.core_type<tc>, window_params = [{transform_indices = @transform_0, window_bounds = array<i64: 1, 160, 16>}, {pipeline_mode = #tpu.pipeline_mode<synchronous>, transform_indices = @transform_1, window_bounds = array<i64: 128, 1>}, {pipeline_mode = #tpu.pipeline_mode<synchronous>, transform_indices = @transform_2, window_bounds = array<i64: 4, 16, 8>}, {pipeline_mode = #tpu.pipeline_mode<synchronous>, transform_indices = @transform_3, window_bounds = array<i64: 1, 8>}, {pipeline_mode = #tpu.pipeline_mode<synchronous>, transform_indices = @transform_4, window_bounds = array<i64: 9, 8, 8>}, {pipeline_mode = #tpu.pipeline_mode<synchronous>, transform_indices = @transform_5, window_bounds = array<i64: 1, 8>}, {transform_indices = @transform_6, window_bounds = array<i64: 1, 8, 128>}, {transform_indices = @transform_7, window_bounds = array<i64: 1, 1, 8>}, {transform_indices = @transform_8, window_bounds = array<i64: 1, 1, 8>}]} {
    %cst = arith.constant 0.000000e+00 : f32
    %0 = vector.broadcast %cst : f32 to vector<32x8xf32>
    %c0 = arith.constant 0 : index
    %c0_0 = arith.constant 0 : index
    %1 = vector.load %arg10[%c0, %c0_0] : memref<192x8xf32, #tpu.memory_space<vmem>>, vector<32x8xf32>
    tpu.vector_store %arg10[%c0, %c0_0], %0 {strides = array<i32>} : memref<192x8xf32, #tpu.memory_space<vmem>>, vector<32x8xf32>,
    %cst_1 = arith.constant 0.000000e+00 : f32
    %2 = vector.broadcast %cst_1 : f32 to vector<32x8xf32>
    %c160 = arith.constant 160 : index
    %c0_2 = arith.constant 0 : index
    %3 = vector.load %arg10[%c160, %c0_2] : memref<192x8xf32, #tpu.memory_space<vmem>>, vector<32x8xf32>
    tpu.vector_store %arg10[%c160, %c0_2], %2 {strides = array<i32>} : memref<192x8xf32, #tpu.memory_space<vmem>>, vector<32x8xf32>,
    %c0_3 = arith.constant 0 : index
    %c0_4 = arith.constant 0 : index
    %4 = vector.load %arg2[%c0_3, %c0_4] : memref<128x1xf32, #tpu.memory_space<vmem>>, vector<128x1xf32>
    %c0_5 = arith.constant 0 : index
    %c0_6 = arith.constant 0 : index
    %5 = vector.load %arg4[%c0_5, %c0_6] : memref<1x8xf32, #tpu.memory_space<vmem>>, vector<1x8xf32>
    %c0_7 = arith.constant 0 : index
    %c0_8 = arith.constant 0 : index
    %6 = vector.load %arg6[%c0_7, %c0_8] : memref<1x8xf32, #tpu.memory_space<vmem>>, vector<1x8xf32>
    %cst_9 = arith.constant 0.000000e+00 : f32
    %7 = vector.broadcast %cst_9 : f32 to vector<128x8xf32>
    %c0_10 = arith.constant 0 : index
    %c0_11 = arith.constant 0 : index
    %c0_12 = arith.constant 0 : index
    %8 = vector.load %arg1[%c0_10, %c0_11, %c0_12] : memref<1x160x16xf32, #tpu.memory_space<vmem>>, vector<1x128x16xf32>
    %9 = vector.shape_cast %8 : vector<1x128x16xf32> to vector<128x16xf32>
    %c0_13 = arith.constant 0 : index
    %c0_14 = arith.constant 0 : index
    %c0_15 = arith.constant 0 : index
    %10 = vector.load %arg3[%c0_13, %c0_14, %c0_15] : memref<4x16x8xf32, #tpu.memory_space<vmem>>, vector<1x16x8xf32>
    %11 = vector.shape_cast %10 : vector<1x16x8xf32> to vector<16x8xf32>
    %cst_16 = arith.constant dense<0.000000e+00> : vector<128x8xf32>
    %12 = tpu.matmul %9, %11, %cst_16 {dimension_numbers = #tpu.dot_dimension_numbers<[1], [0], [0], [1], [0, 0, 1, 1], [], []>} : vector<128x16xf32>, vector<16x8xf32>, vector<128x8xf32> -> vector<128x8xf32>
    %13 = arith.addf %7, %12 : vector<128x8xf32>
    %c0_17 = arith.constant 0 : index
    %c1 = arith.constant 1 : index
    %c0_18 = arith.constant 0 : index
    %14 = vector.load %arg1[%c0_17, %c1, %c0_18] : memref<1x160x16xf32, #tpu.memory_space<vmem>>, vector<1x128x16xf32>
    %15 = vector.shape_cast %14 : vector<1x128x16xf32> to vector<128x16xf32>
    %c1_19 = arith.constant 1 : index
    %c0_20 = arith.constant 0 : index
    %c0_21 = arith.constant 0 : index
    %16 = vector.load %arg3[%c1_19, %c0_20, %c0_21] : memref<4x16x8xf32, #tpu.memory_space<vmem>>, vector<1x16x8xf32>
    %17 = vector.shape_cast %16 : vector<1x16x8xf32> to vector<16x8xf32>
    %cst_22 = arith.constant dense<0.000000e+00> : vector<128x8xf32>
    %18 = tpu.matmul %15, %17, %cst_22 {dimension_numbers = #tpu.dot_dimension_numbers<[1], [0], [0], [1], [0, 0, 1, 1], [], []>} : vector<128x16xf32>, vector<16x8xf32>, vector<128x8xf32> -> vector<128x8xf32>
    %19 = arith.addf %13, %18 : vector<128x8xf32>
    %c0_23 = arith.constant 0 : index
    %c16 = arith.constant 16 : index
    %c0_24 = arith.constant 0 : index
    %20 = vector.load %arg1[%c0_23, %c16, %c0_24] : memref<1x160x16xf32, #tpu.memory_space<vmem>>, vector<1x128x16xf32>
    %21 = vector.shape_cast %20 : vector<1x128x16xf32> to vector<128x16xf32>
    %c2 = arith.constant 2 : index
    %c0_25 = arith.constant 0 : index
    %c0_26 = arith.constant 0 : index
    %22 = vector.load %arg3[%c2, %c0_25, %c0_26] : memref<4x16x8xf32, #tpu.memory_space<vmem>>, vector<1x16x8xf32>
    %23 = vector.shape_cast %22 : vector<1x16x8xf32> to vector<16x8xf32>
    %cst_27 = arith.constant dense<0.000000e+00> : vector<128x8xf32>
    %24 = tpu.matmul %21, %23, %cst_27 {dimension_numbers = #tpu.dot_dimension_numbers<[1], [0], [0], [1], [0, 0, 1, 1], [], []>} : vector<128x16xf32>, vector<16x8xf32>, vector<128x8xf32> -> vector<128x8xf32>
    %25 = arith.addf %19, %24 : vector<128x8xf32>
    %c0_28 = arith.constant 0 : index
    %c17 = arith.constant 17 : index
    %c0_29 = arith.constant 0 : index
    %26 = vector.load %arg1[%c0_28, %c17, %c0_29] : memref<1x160x16xf32, #tpu.memory_space<vmem>>, vector<1x128x16xf32>
    %27 = vector.shape_cast %26 : vector<1x128x16xf32> to vector<128x16xf32>
    %c3 = arith.constant 3 : index
    %c0_30 = arith.constant 0 : index
    %c0_31 = arith.constant 0 : index
    %28 = vector.load %arg3[%c3, %c0_30, %c0_31] : memref<4x16x8xf32, #tpu.memory_space<vmem>>, vector<1x16x8xf32>
    %29 = vector.shape_cast %28 : vector<1x16x8xf32> to vector<16x8xf32>
    %cst_32 = arith.constant dense<0.000000e+00> : vector<128x8xf32>
    %30 = tpu.matmul %27, %29, %cst_32 {dimension_numbers = #tpu.dot_dimension_numbers<[1], [0], [0], [1], [0, 0, 1, 1], [], []>} : vector<128x16xf32>, vector<16x8xf32>, vector<128x8xf32> -> vector<128x8xf32>
    %31 = arith.addf %25, %30 : vector<128x8xf32>
    %32 = vector.broadcast %5 : vector<1x8xf32> to vector<128x8xf32>
    %33 = arith.addf %31, %32 : vector<128x8xf32>
    %cst_33 = arith.constant 0.000000e+00 : f32
    %34 = vector.broadcast %cst_33 : f32 to vector<128x8xf32>
    %35 = arith.maximumf %33, %34 : vector<128x8xf32>
    %36 = vector.broadcast %4 : vector<128x1xf32> to vector<128x8xf32>
    %37 = arith.mulf %35, %36 : vector<128x8xf32>
    %c32 = arith.constant 32 : index
    %c0_34 = arith.constant 0 : index
    %38 = vector.load %arg10[%c32, %c0_34] : memref<192x8xf32, #tpu.memory_space<vmem>>, vector<128x8xf32>
    tpu.vector_store %arg10[%c32, %c0_34], %37 {strides = array<i32>} : memref<192x8xf32, #tpu.memory_space<vmem>>, vector<128x8xf32>,
    %cst_35 = arith.constant 0.000000e+00 : f32
    %39 = vector.broadcast %cst_35 : f32 to vector<128x8xf32>
    %c15 = arith.constant 15 : index
    %c0_36 = arith.constant 0 : index
    %40 = vector.load %arg10[%c15, %c0_36] : memref<192x8xf32, #tpu.memory_space<vmem>>, vector<128x8xf32>
    %c0_37 = arith.constant 0 : index
    %c0_38 = arith.constant 0 : index
    %c0_39 = arith.constant 0 : index
    %41 = vector.load %arg5[%c0_37, %c0_38, %c0_39] : memref<9x8x8xf32, #tpu.memory_space<vmem>>, vector<1x8x8xf32>
    %42 = vector.shape_cast %41 : vector<1x8x8xf32> to vector<8x8xf32>
    %cst_40 = arith.constant dense<0.000000e+00> : vector<128x8xf32>
    %43 = tpu.matmul %40, %42, %cst_40 {dimension_numbers = #tpu.dot_dimension_numbers<[1], [0], [0], [1], [0, 0, 1, 1], [], []>} : vector<128x8xf32>, vector<8x8xf32>, vector<128x8xf32> -> vector<128x8xf32>
    %44 = arith.addf %39, %43 : vector<128x8xf32>
    %c16_41 = arith.constant 16 : index
    %c0_42 = arith.constant 0 : index
    %45 = vector.load %arg10[%c16_41, %c0_42] : memref<192x8xf32, #tpu.memory_space<vmem>>, vector<128x8xf32>
    %c1_43 = arith.constant 1 : index
    %c0_44 = arith.constant 0 : index
    %c0_45 = arith.constant 0 : index
    %46 = vector.load %arg5[%c1_43, %c0_44, %c0_45] : memref<9x8x8xf32, #tpu.memory_space<vmem>>, vector<1x8x8xf32>
    %47 = vector.shape_cast %46 : vector<1x8x8xf32> to vector<8x8xf32>
    %cst_46 = arith.constant dense<0.000000e+00> : vector<128x8xf32>
    %48 = tpu.matmul %45, %47, %cst_46 {dimension_numbers = #tpu.dot_dimension_numbers<[1], [0], [0], [1], [0, 0, 1, 1], [], []>} : vector<128x8xf32>, vector<8x8xf32>, vector<128x8xf32> -> vector<128x8xf32>
    %49 = arith.addf %44, %48 : vector<128x8xf32>
    %c17_47 = arith.constant 17 : index
    %c0_48 = arith.constant 0 : index
    %50 = vector.load %arg10[%c17_47, %c0_48] : memref<192x8xf32, #tpu.memory_space<vmem>>, vector<128x8xf32>
    %c2_49 = arith.constant 2 : index
    %c0_50 = arith.constant 0 : index
    %c0_51 = arith.constant 0 : index
    %51 = vector.load %arg5[%c2_49, %c0_50, %c0_51] : memref<9x8x8xf32, #tpu.memory_space<vmem>>, vector<1x8x8xf32>
    %52 = vector.shape_cast %51 : vector<1x8x8xf32> to vector<8x8xf32>
    %cst_52 = arith.constant dense<0.000000e+00> : vector<128x8xf32>
    %53 = tpu.matmul %50, %52, %cst_52 {dimension_numbers = #tpu.dot_dimension_numbers<[1], [0], [0], [1], [0, 0, 1, 1], [], []>} : vector<128x8xf32>, vector<8x8xf32>, vector<128x8xf32> -> vector<128x8xf32>
    %54 = arith.addf %49, %53 : vector<128x8xf32>
    %c31 = arith.constant 31 : index
    %c0_53 = arith.constant 0 : index
    %55 = vector.load %arg10[%c31, %c0_53] : memref<192x8xf32, #tpu.memory_space<vmem>>, vector<128x8xf32>
    %c3_54 = arith.constant 3 : index
    %c0_55 = arith.constant 0 : index
    %c0_56 = arith.constant 0 : index
    %56 = vector.load %arg5[%c3_54, %c0_55, %c0_56] : memref<9x8x8xf32, #tpu.memory_space<vmem>>, vector<1x8x8xf32>
    %57 = vector.shape_cast %56 : vector<1x8x8xf32> to vector<8x8xf32>
    %cst_57 = arith.constant dense<0.000000e+00> : vector<128x8xf32>
    %58 = tpu.matmul %55, %57, %cst_57 {dimension_numbers = #tpu.dot_dimension_numbers<[1], [0], [0], [1], [0, 0, 1, 1], [], []>} : vector<128x8xf32>, vector<8x8xf32>, vector<128x8xf32> -> vector<128x8xf32>
    %59 = arith.addf %54, %58 : vector<128x8xf32>
    %c32_58 = arith.constant 32 : index
    %c0_59 = arith.constant 0 : index
    %60 = vector.load %arg10[%c32_58, %c0_59] : memref<192x8xf32, #tpu.memory_space<vmem>>, vector<128x8xf32>
    %c4 = arith.constant 4 : index
    %c0_60 = arith.constant 0 : index
    %c0_61 = arith.constant 0 : index
    %61 = vector.load %arg5[%c4, %c0_60, %c0_61] : memref<9x8x8xf32, #tpu.memory_space<vmem>>, vector<1x8x8xf32>
    %62 = vector.shape_cast %61 : vector<1x8x8xf32> to vector<8x8xf32>
    %cst_62 = arith.constant dense<0.000000e+00> : vector<128x8xf32>
    %63 = tpu.matmul %60, %62, %cst_62 {dimension_numbers = #tpu.dot_dimension_numbers<[1], [0], [0], [1], [0, 0, 1, 1], [], []>} : vector<128x8xf32>, vector<8x8xf32>, vector<128x8xf32> -> vector<128x8xf32>
    %64 = arith.addf %59, %63 : vector<128x8xf32>
    %c33 = arith.constant 33 : index
    %c0_63 = arith.constant 0 : index
    %65 = vector.load %arg10[%c33, %c0_63] : memref<192x8xf32, #tpu.memory_space<vmem>>, vector<128x8xf32>
    %c5 = arith.constant 5 : index
    %c0_64 = arith.constant 0 : index
    %c0_65 = arith.constant 0 : index
    %66 = vector.load %arg5[%c5, %c0_64, %c0_65] : memref<9x8x8xf32, #tpu.memory_space<vmem>>, vector<1x8x8xf32>
    %67 = vector.shape_cast %66 : vector<1x8x8xf32> to vector<8x8xf32>
    %cst_66 = arith.constant dense<0.000000e+00> : vector<128x8xf32>
    %68 = tpu.matmul %65, %67, %cst_66 {dimension_numbers = #tpu.dot_dimension_numbers<[1], [0], [0], [1], [0, 0, 1, 1], [], []>} : vector<128x8xf32>, vector<8x8xf32>, vector<128x8xf32> -> vector<128x8xf32>
    %69 = arith.addf %64, %68 : vector<128x8xf32>
    %c47 = arith.constant 47 : index
    %c0_67 = arith.constant 0 : index
    %70 = vector.load %arg10[%c47, %c0_67] : memref<192x8xf32, #tpu.memory_space<vmem>>, vector<128x8xf32>
    %c6 = arith.constant 6 : index
    %c0_68 = arith.constant 0 : index
    %c0_69 = arith.constant 0 : index
    %71 = vector.load %arg5[%c6, %c0_68, %c0_69] : memref<9x8x8xf32, #tpu.memory_space<vmem>>, vector<1x8x8xf32>
    %72 = vector.shape_cast %71 : vector<1x8x8xf32> to vector<8x8xf32>
    %cst_70 = arith.constant dense<0.000000e+00> : vector<128x8xf32>
    %73 = tpu.matmul %70, %72, %cst_70 {dimension_numbers = #tpu.dot_dimension_numbers<[1], [0], [0], [1], [0, 0, 1, 1], [], []>} : vector<128x8xf32>, vector<8x8xf32>, vector<128x8xf32> -> vector<128x8xf32>
    %74 = arith.addf %69, %73 : vector<128x8xf32>
    %c48 = arith.constant 48 : index
    %c0_71 = arith.constant 0 : index
    %75 = vector.load %arg10[%c48, %c0_71] : memref<192x8xf32, #tpu.memory_space<vmem>>, vector<128x8xf32>
    %c7 = arith.constant 7 : index
    %c0_72 = arith.constant 0 : index
    %c0_73 = arith.constant 0 : index
    %76 = vector.load %arg5[%c7, %c0_72, %c0_73] : memref<9x8x8xf32, #tpu.memory_space<vmem>>, vector<1x8x8xf32>
    %77 = vector.shape_cast %76 : vector<1x8x8xf32> to vector<8x8xf32>
    %cst_74 = arith.constant dense<0.000000e+00> : vector<128x8xf32>
    %78 = tpu.matmul %75, %77, %cst_74 {dimension_numbers = #tpu.dot_dimension_numbers<[1], [0], [0], [1], [0, 0, 1, 1], [], []>} : vector<128x8xf32>, vector<8x8xf32>, vector<128x8xf32> -> vector<128x8xf32>
    %79 = arith.addf %74, %78 : vector<128x8xf32>
    %c49 = arith.constant 49 : index
    %c0_75 = arith.constant 0 : index
    %80 = vector.load %arg10[%c49, %c0_75] : memref<192x8xf32, #tpu.memory_space<vmem>>, vector<128x8xf32>
    %c8 = arith.constant 8 : index
    %c0_76 = arith.constant 0 : index
    %c0_77 = arith.constant 0 : index
    %81 = vector.load %arg5[%c8, %c0_76, %c0_77] : memref<9x8x8xf32, #tpu.memory_space<vmem>>, vector<1x8x8xf32>
    %82 = vector.shape_cast %81 : vector<1x8x8xf32> to vector<8x8xf32>
    %cst_78 = arith.constant dense<0.000000e+00> : vector<128x8xf32>
    %83 = tpu.matmul %80, %82, %cst_78 {dimension_numbers = #tpu.dot_dimension_numbers<[1], [0], [0], [1], [0, 0, 1, 1], [], []>} : vector<128x8xf32>, vector<8x8xf32>, vector<128x8xf32> -> vector<128x8xf32>
    %84 = arith.addf %79, %83 : vector<128x8xf32>
    %85 = vector.broadcast %6 : vector<1x8xf32> to vector<128x8xf32>
    %86 = arith.addf %84, %85 : vector<128x8xf32>
    %87 = vector.broadcast %4 : vector<128x1xf32> to vector<128x8xf32>
    %88 = arith.mulf %86, %87 : vector<128x8xf32>
    %cst_79 = arith.constant dense<0.000000e+00> : vector<8xf32>
    %89 = vector.multi_reduction <add>, %88, %cst_79 [0] : vector<128x8xf32> to vector<8xf32>
    %90 = vector.shape_cast %89 : vector<8xf32> to vector<1x8xf32>
    %c0_80 = arith.constant 0 : index
    %c0_81 = arith.constant 0 : index
    %c0_82 = arith.constant 0 : index
    %91 = vector.load %arg8[%c0_80, %c0_81, %c0_82] : memref<1x1x8xf32, #tpu.memory_space<vmem>>, vector<1x1x8xf32>
    %92 = vector.shape_cast %91 : vector<1x1x8xf32> to vector<1x8xf32>
    %93 = vector.shape_cast %90 : vector<1x8xf32> to vector<1x1x8xf32>
    tpu.vector_store %arg8[%c0_80, %c0_81, %c0_82], %93 {strides = array<i32>} : memref<1x1x8xf32, #tpu.memory_space<vmem>>, vector<1x1x8xf32>,
    %94 = arith.mulf %88, %88 : vector<128x8xf32>
    %cst_83 = arith.constant dense<0.000000e+00> : vector<8xf32>
    %95 = vector.multi_reduction <add>, %94, %cst_83 [0] : vector<128x8xf32> to vector<8xf32>
    %96 = vector.shape_cast %95 : vector<8xf32> to vector<1x8xf32>
    %c0_84 = arith.constant 0 : index
    %c0_85 = arith.constant 0 : index
    %c0_86 = arith.constant 0 : index
    %97 = vector.load %arg9[%c0_84, %c0_85, %c0_86] : memref<1x1x8xf32, #tpu.memory_space<vmem>>, vector<1x1x8xf32>
    %98 = vector.shape_cast %97 : vector<1x1x8xf32> to vector<1x8xf32>
    %99 = vector.shape_cast %96 : vector<1x8xf32> to vector<1x1x8xf32>
    tpu.vector_store %arg9[%c0_84, %c0_85, %c0_86], %99 {strides = array<i32>} : memref<1x1x8xf32, #tpu.memory_space<vmem>>, vector<1x1x8xf32>,
    %100 = tpu.transpose %88, [1, 0] : vector<128x8xf32> -> vector<8x128xf32>
    %c0_87 = arith.constant 0 : index
    %c0_88 = arith.constant 0 : index
    %c0_89 = arith.constant 0 : index
    %101 = vector.load %arg7[%c0_87, %c0_88, %c0_89] : memref<1x8x128xf32, #tpu.memory_space<vmem>>, vector<1x8x128xf32>
    %102 = vector.shape_cast %101 : vector<1x8x128xf32> to vector<8x128xf32>
    %103 = vector.shape_cast %100 : vector<8x128xf32> to vector<1x8x128xf32>
    tpu.vector_store %arg7[%c0_87, %c0_88, %c0_89], %103 {strides = array<i32>} : memref<1x8x128xf32, #tpu.memory_space<vmem>>, vector<1x8x128xf32>,
    return
  }
  func.func @transform_0(%arg0: i32) -> (i32, i32, i32) {
    %c0_i32 = arith.constant 0 : i32
    %c0_i32_0 = arith.constant 0 : i32
    %c0_i32_1 = arith.constant 0 : i32
    return %arg0, %c0_i32, %c0_i32_0 : i32, i32, i32
  }
  func.func @transform_1(%arg0: i32) -> (i32, i32) {
    %c0_i32 = arith.constant 0 : i32
    %c0_i32_0 = arith.constant 0 : i32
    %c0_i32_1 = arith.constant 0 : i32
    return %c0_i32, %c0_i32_0 : i32, i32
  }
  func.func @transform_2(%arg0: i32) -> (i32, i32, i32) {
    %c0_i32 = arith.constant 0 : i32
    %c0_i32_0 = arith.constant 0 : i32
    %c0_i32_1 = arith.constant 0 : i32
    %c0_i32_2 = arith.constant 0 : i32
    return %c0_i32, %c0_i32_0, %c0_i32_1 : i32, i32, i32
  }
  func.func @transform_3(%arg0: i32) -> (i32, i32) {
    %c0_i32 = arith.constant 0 : i32
    %c0_i32_0 = arith.constant 0 : i32
    %c0_i32_1 = arith.constant 0 : i32
    return %c0_i32, %c0_i32_0 : i32, i32
  }
  func.func @transform_4(%arg0: i32) -> (i32, i32, i32) {
    %c0_i32 = arith.constant 0 : i32
    %c0_i32_0 = arith.constant 0 : i32
    %c0_i32_1 = arith.constant 0 : i32
    %c0_i32_2 = arith.constant 0 : i32
    return %c0_i32, %c0_i32_0, %c0_i32_1 : i32, i32, i32
  }
  func.func @transform_5(%arg0: i32) -> (i32, i32) {
    %c0_i32 = arith.constant 0 : i32
    %c0_i32_0 = arith.constant 0 : i32
    %c0_i32_1 = arith.constant 0 : i32
    return %c0_i32, %c0_i32_0 : i32, i32
  }
  func.func @transform_6(%arg0: i32) -> (i32, i32, i32) {
    %c0_i32 = arith.constant 0 : i32
    %c0_i32_0 = arith.constant 0 : i32
    %c0_i32_1 = arith.constant 0 : i32
    return %arg0, %c0_i32, %c0_i32_0 : i32, i32, i32
  }
  func.func @transform_7(%arg0: i32) -> (i32, i32, i32) {
    %c0_i32 = arith.constant 0 : i32
    %c0_i32_0 = arith.constant 0 : i32
    %c0_i32_1 = arith.constant 0 : i32
    return %arg0, %c0_i32, %c0_i32_0 : i32, i32, i32
  }
  func.func @transform_8(%arg0: i32) -> (i32, i32, i32) {
    %c0_i32 = arith.constant 0 : i32
    %c0_i32_0 = arith.constant 0 : i32
    %c0_i32_1 = arith.constant 0 : i32
    return %arg0, %c0_i32, %c0_i32_0 : i32, i32, i32
  }
}

module attributes {stable_mosaic.version = 11 : i64} {
  func.func @_bn_relu_kernel(%arg0: i32, %arg1: i32, %arg2: memref<1x8x8x16xf32, #tpu.memory_space<vmem>>, %arg3: memref<8x1x1xf32, #tpu.memory_space<vmem>>, %arg4: memref<8x1x1xf32, #tpu.memory_space<vmem>>, %arg5: memref<1x8x8x8xf32, #tpu.memory_space<vmem>>) attributes {dimension_semantics = [#tpu.dimension_semantics<parallel>, #tpu.dimension_semantics<parallel>], iteration_bounds = array<i64: 2, 1>, scalar_prefetch = 0 : i64, scratch_operands = 0 : i64, tpu.core_type = #tpu.core_type<tc>, window_params = [{transform_indices = @transform_0, window_bounds = array<i64: 1, 8, 8, 16>}, {pipeline_mode = #tpu.pipeline_mode<synchronous>, transform_indices = @transform_1, window_bounds = array<i64: 8, 1, 1>}, {pipeline_mode = #tpu.pipeline_mode<synchronous>, transform_indices = @transform_2, window_bounds = array<i64: 8, 1, 1>}, {transform_indices = @transform_3, window_bounds = array<i64: 1, 8, 8, 8>}]} {
    %c0 = arith.constant 0 : index
    %c0_0 = arith.constant 0 : index
    %c0_1 = arith.constant 0 : index
    %c0_2 = arith.constant 0 : index
    %0 = vector.load %arg2[%c0, %c0_0, %c0_1, %c0_2] : memref<1x8x8x16xf32, #tpu.memory_space<vmem>>, vector<1x8x8x16xf32>
    %1 = vector.shape_cast %0 : vector<1x8x8x16xf32> to vector<8x8x16xf32>
    %2 = vector.extract_strided_slice %1 {offsets = [0, 0, 0], sizes = [8, 8, 8], strides = [1, 1, 1]} : vector<8x8x16xf32> to vector<8x8x8xf32>
    %c0_3 = arith.constant 0 : index
    %c0_4 = arith.constant 0 : index
    %c0_5 = arith.constant 0 : index
    %3 = vector.load %arg3[%c0_3, %c0_4, %c0_5] : memref<8x1x1xf32, #tpu.memory_space<vmem>>, vector<8x1x1xf32>
    %4 = vector.broadcast %3 : vector<8x1x1xf32> to vector<8x8x8xf32>
    %5 = arith.mulf %2, %4 : vector<8x8x8xf32>
    %c0_6 = arith.constant 0 : index
    %c0_7 = arith.constant 0 : index
    %c0_8 = arith.constant 0 : index
    %6 = vector.load %arg4[%c0_6, %c0_7, %c0_8] : memref<8x1x1xf32, #tpu.memory_space<vmem>>, vector<8x1x1xf32>
    %7 = vector.broadcast %6 : vector<8x1x1xf32> to vector<8x8x8xf32>
    %8 = arith.addf %5, %7 : vector<8x8x8xf32>
    %cst = arith.constant 0.000000e+00 : f32
    %9 = vector.broadcast %cst : f32 to vector<8x8x8xf32>
    %10 = arith.maximumf %8, %9 : vector<8x8x8xf32>
    %c0_9 = arith.constant 0 : index
    %c0_10 = arith.constant 0 : index
    %c0_11 = arith.constant 0 : index
    %c0_12 = arith.constant 0 : index
    %11 = vector.load %arg5[%c0_9, %c0_10, %c0_11, %c0_12] : memref<1x8x8x8xf32, #tpu.memory_space<vmem>>, vector<1x8x8x8xf32>
    %12 = vector.shape_cast %11 : vector<1x8x8x8xf32> to vector<8x8x8xf32>
    %13 = vector.shape_cast %10 : vector<8x8x8xf32> to vector<1x8x8x8xf32>
    tpu.vector_store %arg5[%c0_9, %c0_10, %c0_11, %c0_12], %13 {strides = array<i32>} : memref<1x8x8x8xf32, #tpu.memory_space<vmem>>, vector<1x8x8x8xf32>,
    return
  }
  func.func @transform_0(%arg0: i32, %arg1: i32) -> (i32, i32, i32, i32) {
    %c0_i32 = arith.constant 0 : i32
    %c0_i32_0 = arith.constant 0 : i32
    %c0_i32_1 = arith.constant 0 : i32
    return %arg0, %c0_i32, %arg1, %c0_i32_0 : i32, i32, i32, i32
  }
  func.func @transform_1(%arg0: i32, %arg1: i32) -> (i32, i32, i32) {
    %c0_i32 = arith.constant 0 : i32
    %c0_i32_0 = arith.constant 0 : i32
    %c0_i32_1 = arith.constant 0 : i32
    %c0_i32_2 = arith.constant 0 : i32
    return %c0_i32, %c0_i32_0, %c0_i32_1 : i32, i32, i32
  }
  func.func @transform_2(%arg0: i32, %arg1: i32) -> (i32, i32, i32) {
    %c0_i32 = arith.constant 0 : i32
    %c0_i32_0 = arith.constant 0 : i32
    %c0_i32_1 = arith.constant 0 : i32
    %c0_i32_2 = arith.constant 0 : i32
    return %c0_i32, %c0_i32_0, %c0_i32_1 : i32, i32, i32
  }
  func.func @transform_3(%arg0: i32, %arg1: i32) -> (i32, i32, i32, i32) {
    %c0_i32 = arith.constant 0 : i32
    %c0_i32_0 = arith.constant 0 : i32
    %c0_i32_1 = arith.constant 0 : i32
    return %arg0, %c0_i32, %arg1, %c0_i32_0 : i32, i32, i32, i32
  }
}

</mosaic_0001>

<bundles_post_ra>
// kernel: _lambda_.3
= control target key start
LH: loop header
LB: loop body
LE: loop exit
PB: predicated region body
PF: predicated region fallthrough
CT: control target
= control target key end

     0   :  { %8 = vsyncpa [#allocation3], 0  ;;  %s815_s0 = inlined_call_operand.vmem [shape: f32[2,8,8,16], index: 0, kind: input, shape index: {}]   ;;  %s816_s1 = inlined_call_operand.vmem [shape: f32[8,1,1], index: 1, kind: input, shape index: {}]   ;;  %s817_s2 = inlined_call_operand.vmem [shape: f32[8,1,1], index: 2, kind: input, shape index: {}]   ;;  %s818_s3 = inlined_call_operand.hbm [shape: f32[2,8,8,8], index: 3, kind: output, shape index: {}]  }
   0x1   :  { %10 = vsyncpa [#allocation3 + $0x1], 0  ;;  %s637_s12 = smov 0   ;;  %s639_s13 = smov 0  }
   0x2   :  { %s641_s14 = smov 0   ;;  %s643_s15 = smov 0  }
   0x3   :  { %s645_s16 = smov 0   ;;  %s647_s17 = smov 0  }
   0x4 LB: > { %s442_s18 = sadd.s32 4294967295, %s612_s17   ;;  %s443_s19 = sadd.s32 4294967294, %s612_s17   ;;  %s612_s17 = sphi %s647_s17, %s16_s17   ;;  %s608_s16 = sphi %s645_s16, %s825_s16   ;;  %s604_s15 = sphi %s643_s15, %s824_s15   ;;  %s600_s14 = sphi %s641_s14, %s823_s14   ;;  %s596_s13 = sphi %s639_s13, %s822_s13   ;;  %s592_s12 = sphi %s637_s12, %s821_s12  }
   0x5   : > { %s28_s20 = sadd.s32 1, %s608_s16  ;;  %s107_s21 = sadd.s32 1, %s600_s14 }
   0x6   : > { %p30_p0 = scmp.ge.s32.totalorder %s28_s20, 2  ;;  %p117_p1 = scmp.ne.s32.totalorder %s600_s14, %s596_s13 }
   0x7   : > { %p118_p2 = scmp.eq.s32.totalorder %s442_s18, 1  ;;  %p123_p3 = scmp.ne.s32.totalorder %s596_s13, %s592_s12 }
   0x8   : > { %s827_s20 = smov (%p30_p0, %s28_s20), 0  ;;  %p124_p5 = scmp.eq.s32.totalorder %s443_s19, 1 }
   0x9   : > { %p677_p4 = por %p118_p2, %p117_p1  ;;  %s102_s23 = ssub.s32 %s608_s16, %s827_s20 }
   0xa   : > { %p446_p6 = scmp.ge.s32.totalorder %s612_s17, 1  ;;  %p105_p7 = scmp.eq.s32.totalorder %s102_s23, 0 }
   0xb   : > { %p684_p8 = por %p124_p5, %p123_p3  ;;  %p159_p9 = scmp.lt.s32.totalorder %s612_s17, 3 }
   0xc   : > { %s690_s25 = scalar_select %p105_p7, %s600_s14, %s107_s21  }
   0xd   : > { %p160_p10 = pnand %p446_p6, %p159_p9 }
   0xe   : > { %p186_p11 = scmp.lt.s32.totalorder (!%p160_p10), %s604_s15, 1  ;;  %s183_s29 = sand.u32 (!%p160_p10), 1, %s596_s13  }
   0xf   : > { %163 = sbr.rel (%p160_p10) target bundleno = 186 (0xba), region = 32  ;;  %s447_s30 = sshll.u32 (!%p160_p10), %s183_s29, 6 }
  0x10   : > { %s752_s4 = scalar_lea.vmem (!%p160_p10), [#allocation2], %s447_s30  ;;  %s456_s5 = sshll.u32 (!%p160_p10), %s604_s15, 6 }
  0x11   : > { %s360_s8 = scalar_lea.hbm (!%p160_p10), %s818_s3, %s456_s5  ;;  %s361_s9 = sshll.u32 (!%p160_p10), %s752_s4, 4  ;;  %s362_s9 = int_to_ptr.vmem [resolvable:$true] %s361_s9 }
  0x12   : > { %s363_s10 = sshll.u32 (!%p160_p10), %s360_s8, 4  ;;  %s364_s10 = int_to_ptr.hbm [resolvable:$true] %s363_s10 }
  0x13   : > { %s548_s11 = sshra.s32 (!%p160_p10), %s364_s10, 4  ;;  %s549_s11 = int_to_ptr.hbm [resolvable:$true] %s548_s11 }
  0x14   : > { %v518_v0 = vld [vmem:[%s816_s1 + $0x4] ss:$0 sm:$0xff]  ;;  %v614_v1 = vmov 0   ;;  %v519_v2 = vld [vmem:[%s816_s1 + $0x2] ss:$0 sm:$0xff]  ;;  %s187_s21 = scalar_select %p186_p11, %s604_s15, 1 }
  0x15   : > { %517 = vset.pattern.permute.xlu2 %v614_v1  ;;  %516 = vset.pattern.permute.xlu1 %v614_v1  ;;  %v520_v3 = vld [vmem:[%s816_s1] ss:$0 sm:$0xff]  ;;  %v521_v4 = vld [vmem:[%s816_s1 + $0x5] ss:$0 sm:$0xff]  ;;  %v522_v5 = vld [vmem:[%s816_s1 + $0x3] ss:$0 sm:$0xff]  ;;  %p555_p1 = scmp.lt.s32.totalorder %s549_s11, %s818_s3 }
  0x16   : > { %515 = vset.pattern.permute.xlu0 %v614_v1  ;;  %243 = vperm.xlu2 %517, %v518_v0   ;;  %v523_v6 = vld [vmem:[%s816_s1 + $0x1] ss:$0 sm:$0xff]  ;;  %v524_v7 = vld [vmem:[%s817_s2] ss:$0 sm:$0xff]  ;;  %v525_v8 = vld [vmem:[%s816_s1 + $0x7] ss:$0 sm:$0xff] }
  0x17   : > { %235 = vperm.xlu1 %516, %v519_v2   ;;  %227 = vperm.xlu0 %515, %v520_v3   ;;  %v526_v9 = vld [vmem:[%s816_s1 + $0x6] ss:$0 sm:$0xff]  ;;  %v527_v10 = vld [vmem:[%s817_s2 + $0x3] ss:$0 sm:$0xff]  ;;  %v528_v11 = vld [vmem:[%s817_s2 + $0x2] ss:$0 sm:$0xff] }
  0x18   : > { %v529_v12 = vld [vmem:[%s817_s2 + $0x1] ss:$0 sm:$0xff]  ;;  %v530_v13 = vld [vmem:[%s817_s2 + $0x6] ss:$0 sm:$0xff]  ;;  %v531_v14 = vld [vmem:[%s817_s2 + $0x5] ss:$0 sm:$0xff] }
  0x19   : > { %v532_v15 = vld [vmem:[%s817_s2 + $0x4] ss:$0 sm:$0xff]  ;;  %v533_v16 = vld [vmem:[%s817_s2 + $0x7] ss:$0 sm:$0xff]  ;;  %s455_s23 = sshll.u32 %s187_s21, 6  ;;  %vm338_vm0 = vcmask 64512  }
  0x1a   : > { %s745_s28 = scalar_lea.vmem %s815_s0, %s455_s23  ;;  %s348_s15 = scalar_lea.sflag [#allocation3], %s183_s29 }
  0x1b   : > { %v194_v20 = vld [vmem:[%s745_s28] sm:$0xff]  ;;  %v197_v26 = vld [vmem:[%s745_s28 + $0x18] sm:$0xff]  ;;  %v200_v33 = vld [vmem:[%s745_s28 + $0x30] sm:$0xff]  ;;  %s550_s18 = scalar_lea.hbm %s549_s11, 64  ;;  %s554_s23 = scalar_lea.hbm %s818_s3, 128 }
  0x1c   : > { %v196_v38 = vld [vmem:[%s745_s28 + $0x10] sm:$0xff]  ;;  %v195_v40 = vld [vmem:[%s745_s28 + $0x8] sm:$0xff]  ;;  %v198_v51 = vld [vmem:[%s745_s28 + $0x20] sm:$0xff]  ;;  %p551_p12 = scmp.ne.s32.totalorder %s549_s11, %s550_s18  ;;  %p556_p2 = scmp.lt.s32.totalorder %s554_s23, %s550_s18 }
  0x1d   : > { %v199_v49 = vld [vmem:[%s745_s28 + $0x28] sm:$0xff]  ;;  %v201_v60 = vld [vmem:[%s745_s28 + $0x38] sm:$0xff] }
  0x1e   : > { %247 = vperm.xlu2 %517, %v521_v4   ;;  %p552_p13 = pnand %p551_p12, %p677_p4  ;;  %p557_p3 = por %p556_p2, %p555_p1 }
  0x1f   : > { %239 = vperm.xlu1 %516, %v522_v5   ;;  %231 = vperm.xlu0 %515, %v523_v6  }
  0x20   : > { %p553_p0 = pneg %p552_p13 }
  0x22   : > { %p558_p5 = pnand %p557_p3, %p553_p0 }
  0x26   : > { %291 = vperm.xlu2 %517, %v524_v7  }
  0x27   : > { %255 = vperm.xlu1 %516, %v525_v8   ;;  %251 = vperm.xlu0 %515, %v526_v9  }
  0x2e   : > { %303 = vperm.xlu2 %517, %v527_v10  }
  0x2f   : > { %299 = vperm.xlu1 %516, %v528_v11   ;;  %295 = vperm.xlu0 %515, %v529_v12  }
  0x36   : > { %315 = vperm.xlu2 %517, %v530_v13  }
  0x37   : > { %311 = vperm.xlu1 %516, %v531_v14   ;;  %307 = vperm.xlu0 %515, %v532_v15  }
  0x3f   : > { %319 = vperm.xlu0 %515, %v533_v16  }
  0x70   : > { %v244_v17 = vpop.permute.xlu2 %243 }
  0x71   : > { %v262_v53 = vmul.f32 %v244_v17, %v198_v51 }
  0x78   : > { %v248_v18 = vpop.permute.xlu2 %247 }
  0x79   : > { %v263_v52 = vmul.f32 %v248_v18, %v199_v49 }
  0x80   : > { %v292_v19 = vpop.permute.xlu2 %291 }
  0x88   : > { %v304_v28 = vpop.permute.xlu2 %303 }
  0x89   : > { %v236_v21 = vpop.permute.xlu1 %235  ;;  %v228_v22 = vpop.permute.xlu0 %227 }
  0x8a   : > { %v258_v23 = vmul.f32 %v228_v22, %v194_v20  ;;  %v260_v42 = vmul.f32 %v236_v21, %v196_v38 }
  0x8c   : > { %v322_v24 = vadd.f32 %v292_v19, %v258_v23 }
  0x8e   : > { %v330_v25 = vmax.f32 %v322_v24, 0.0 }
  0x90   : > { %339 = vst.msk [vmem:[%s752_s4] sm:$0xff] %vm338_vm0, %v330_v25  ;;  %v316_v37 = vpop.permute.xlu2 %315 }
  0x91   : > { %v240_v27 = vpop.permute.xlu1 %239  ;;  %v232_v30 = vpop.permute.xlu0 %231 }
  0x92   : > { %v261_v29 = vmul.f32 %v240_v27, %v197_v26  ;;  %v259_v43 = vmul.f32 %v232_v30, %v195_v40 }
  0x94   : > { %v325_v31 = vadd.f32 %v304_v28, %v261_v29 }
  0x96   : > { %v333_v32 = vmax.f32 %v325_v31, 0.0 }
  0x98   : > { %342 = vst.msk [vmem:[%s752_s4 + $0x18] sm:$0xff] %vm338_vm0, %v333_v32 }
  0x99   : > { %v256_v34 = vpop.permute.xlu1 %255  ;;  %v252_v35 = vpop.permute.xlu0 %251 }
  0x9a   : > { %v264_v36 = vmul.f32 %v252_v35, %v200_v33  ;;  %v265_v61 = vmul.f32 %v256_v34, %v201_v60 }
  0x9c   : > { %v328_v39 = vadd.f32 %v316_v37, %v264_v36 }
  0x9e   : > { %v336_v41 = vmax.f32 %v328_v39, 0.0 }
  0xa0   : > { %345 = vst.msk [vmem:[%s752_s4 + $0x30] sm:$0xff] %vm338_vm0, %v336_v41 }
  0xa1   : > { %v300_v44 = vpop.permute.xlu1 %299  ;;  %v296_v46 = vpop.permute.xlu0 %295 }
  0xa2   : > { %v324_v45 = vadd.f32 %v300_v44, %v260_v42  ;;  %v323_v47 = vadd.f32 %v296_v46, %v259_v43 }
  0xa4   : > { %v332_v48 = vmax.f32 %v324_v45, 0.0  ;;  %v331_v50 = vmax.f32 %v323_v47, 0.0 }
  0xa6   : > { %341 = vst.msk [vmem:[%s752_s4 + $0x10] sm:$0xff] %vm338_vm0, %v332_v48 }
  0xa7   : > { %340 = vst.msk [vmem:[%s752_s4 + $0x8] sm:$0xff] %vm338_vm0, %v331_v50 }
  0xa9   : > { %v312_v54 = vpop.permute.xlu1 %311  ;;  %v308_v56 = vpop.permute.xlu0 %307 }
  0xaa   : > { %v327_v55 = vadd.f32 %v312_v54, %v263_v52  ;;  %v326_v57 = vadd.f32 %v308_v56, %v262_v53 }
  0xac   : > { %v335_v58 = vmax.f32 %v327_v55, 0.0  ;;  %v334_v59 = vmax.f32 %v326_v57, 0.0 }
  0xae   : > { %344 = vst.msk [vmem:[%s752_s4 + $0x28] sm:$0xff] %vm338_vm0, %v335_v58 }
  0xaf   : > { %343 = vst.msk [vmem:[%s752_s4 + $0x20] sm:$0xff] %vm338_vm0, %v334_v59 }
  0xb1   : > { %v320_v62 = vpop.permute.xlu0 %319 }
  0xb2   : > { %v329_v63 = vadd.f32 %v320_v62, %v265_v61 }
  0xb4   : > { %v337_v0 = vmax.f32 %v329_v63, 0.0 }
  0xb6   : > { %346 = vst.msk [vmem:[%s752_s4 + $0x38] sm:$0xff] %vm338_vm0, %v337_v0 }
  0xb7   : > { %561 = shalt.err (!%p558_p5)
}
  0xb8   : > { %s615_s28 = smov 128   ;;  %s616_s29 = smov 8  }
  0xb9   : > { %457 = dma.vmem_to_hbm [thread:$0]  (%p677_p4), %s362_s9, 1024, %s364_s10, %s348_s15, %s615_s28, %s615_s28, %s616_s29  }
  0xba PF: > { %p463_p6 = scmp.ge.s32.totalorder %s612_s17, 2  ;;  %s378_s30 = sand.u32 1, %s592_s12  }
  0xbb   : > { %s379_s4 = scalar_lea.sflag [#allocation3], %s378_s30 }
  0xbc   : > { %p460_p7 = pnand %p463_p6, %p684_p8 }
  0xbe   : > { %p461_p9 = pneg %p460_p7 }
  0xc0   : > { %587 = dma.done.wait (%p461_p9), %s379_s4, 1024  }
  0xc1   : > { %589 = vsyncadd (%p461_p9), %s379_s4, 4294966272  ;;  %s16_s17 = sadd.s32 1, %s612_s17   ;;  %s821_s12 = smov %s596_s13 }
  0xc2   : > { %p13_p10 = scmp.ge.s32.totalorder %s16_s17, 4   ;;  %s822_s13 = smov %s600_s14 }
  0xc3   : > { %s823_s14 = smov %s690_s25  ;;  %s824_s15 = smov %s608_s16 }
  0xc4   : > { %s825_s16 = smov %s827_s20  ;;  %15 = sbr.rel (!%p13_p10) target bundleno = 4 (0x4), region = 67 }
  0xc9   :  { %385 = vsyncpa [#allocation3], 1 }
  0xca   :  { %387 = vsyncpa [#allocation3 + $0x1], 1 }

// kernel: _lambda_.2
= control target key start
LH: loop header
LB: loop body
LE: loop exit
PB: predicated region body
PF: predicated region fallthrough
CT: control target
= control target key end

     0   :  { %s2917_s27 = smov 0   ;;  %s3829_s0 = inlined_call_operand.vmem [shape: f32[2,160,16], index: 0, kind: input, shape index: {}]   ;;  %s3830_s1 = inlined_call_operand.vmem [shape: f32[128,1], index: 1, kind: input, shape index: {}]   ;;  %s3831_s2 = inlined_call_operand.vmem [shape: f32[4,16,8], index: 2, kind: input, shape index: {}]   ;;  %s3832_s3 = inlined_call_operand.vmem [shape: f32[1,8], index: 3, kind: input, shape index: {}]   ;;  %s3833_s4 = inlined_call_operand.vmem [shape: f32[9,8,8], index: 4, kind: input, shape index: {}]   ;;  %s3834_s5 = inlined_call_operand.vmem [shape: f32[1,8], index: 5, kind: input, shape index: {}]   ;;  %s3835_s6 = inlined_call_operand.vmem [shape: f32[2,8,128], index: 6, kind: output, shape index: {0}]   ;;  %s3836_s7 = inlined_call_operand.vmem [shape: f32[2,1,8], index: 7, kind: output, shape index: {1}]   ;;  %s3837_s8 = inlined_call_operand.vmem [shape: f32[2,1,8], index: 8, kind: output, shape index: {2}]  }
   0x1 LB: > { %s2609_s28 = sadd.s32 4294967295, %s2868_s27   ;;  %p2613_p0 = scmp.ge.s32.totalorder %s2868_s27, 1  ;;  %s2868_s27 = sphi %s2917_s27, %s19_s27  }
   0x2   : > { %p267_p1 = scmp.lt.s32.totalorder %s2868_s27, 3 }
   0x4   : > { %p268_p2 = pnand %p2613_p0, %p267_p1 }
   0x6   : > { %271 = sbr.rel (%p268_p2) target bundleno = 740 (0x2e4), region = 44 }
   0xb   : > { %v2617_v0 = vld [vmem:[%s3831_s2 + $0x18] sm:$0xff]  ;;  %v2616_v1 = vld [vmem:[%s3831_s2 + $0x10] sm:$0xff]  ;;  %p306_p3 = scmp.lt.s32.totalorder %s2609_s28, 1  ;;  %v2651_v2 = vld [vmem:[%s3831_s2 + $0x28] sm:$0xff]  ;;  %v2870_v5 = vmov 0   ;;  %vm385_vm0 = vcmask 130048  }
   0xc   : > { %2840 = vmatpush.msra.mxu1 %v2617_v0  ;;  %2841 = vmatpush.msra.mxu2 %v2617_v0  ;;  %v2669_v3 = vld [vmem:[%s3831_s2 + $0x38] sm:$0xff]  ;;  %v365_v4 = vld [vmem:[%s3831_s2 + $0x8] sm:$0xff]  ;;  %v2650_v6 = vld [vmem:[%s3831_s2 + $0x20] sm:$0xff]  ;;  %vm321_vm1 = vcmask 64512   ;;  %v2871_v57 = vmov 0.0   ;;  %vm2417_vm2 = vcmask 57344  }
   0xd   : > { %2842 = vmatpush.msra.mxu3 %v2617_v0  ;;  %s3854_s28 = smov (!%p306_p3, %s2609_s28), 1  ;;  %2857 = vset.pattern.permute.xlu0 %v2870_v5  ;;  %v330_v7 = vld [vmem:[%s3830_s1] sm:$0xff]  ;;  %v2668_v8 = vld [vmem:[%s3831_s2 + $0x30] sm:$0xff]  ;;  %v331_v13 = vld [vmem:[%s3830_s1 + $0x8] sm:$0xff]  ;;  %324 = vst.msk [vmem:[#allocation2 + $0x10] sm:$0xff] %vm321_vm1, %v2871_v57 }
   0xe   : > { %2843 = vmatpush.msra.mxu1 %v2616_v1  ;;  %2844 = vmatpush.msra.mxu2 %v2616_v1  ;;  %s2846_s21 = smul.u32 160, %s3854_s28  ;;  %v364_v9 = vld [vmem:[%s3831_s2] sm:$0xff]  ;;  %v332_v18 = vld [vmem:[%s3830_s1 + $0x10] sm:$0xff]  ;;  %v333_v24 = vld [vmem:[%s3830_s1 + $0x18] sm:$0xff]  ;;  %325 = vst.msk [vmem:[#allocation2 + $0x18] sm:$0xff] %vm321_vm1, %v2871_v57  ;;  %s317_s24 = scalar_lea.vmem %s3836_s7, %s3854_s28 }
   0xf   : > { %2845 = vmatpush.msra.mxu3 %v2616_v1  ;;  %945 = vperm.xlu0 %2857, %v330_v7   ;;  %v336_v20 = vld [vmem:[%s3830_s1 + $0x30] sm:$0xff]  ;;  %v339_v25 = vld [vmem:[%s3830_s1 + $0x48] sm:$0xff]  ;;  %v337_v30 = vld [vmem:[%s3830_s1 + $0x38] sm:$0xff]  ;;  %323 = vst.msk [vmem:[#allocation2 + $0x8] sm:$0xff] %vm321_vm1, %v2871_v57  ;;  %s320_s29 = scalar_lea.vmem %s3837_s8, %s3854_s28  ;;  %s2615_s9 = sshll.u32 %s3854_s28, 3 }
  0x10   : > { %693 = vmatpush.msrb.mxu2 %v2651_v2  ;;  %561 = vmatpush.msrb.mxu1 %v365_v4  ;;  %s2958_s30 = scalar_lea.vmem %s3829_s0, %s2846_s21  ;;  %v342_v31 = vld [vmem:[%s3830_s1 + $0x60] sm:$0xff]  ;;  %v340_v35 = vld [vmem:[%s3830_s1 + $0x50] sm:$0xff]  ;;  %v345_v36 = vld [vmem:[%s3830_s1 + $0x78] sm:$0xff]  ;;  %326 = vst.msk [vmem:[#allocation2 + $0xa0] sm:$0xff] %vm321_vm1, %v2871_v57  ;;  %s314_s11 = scalar_lea.vmem %s3835_s6, %s2615_s9 }
  0x11   : > { %841 = vmatpush.msrb.mxu3 %v2669_v3  ;;  %v2961_v10 = vld [vmem:[%s2958_s30 + $0x21] sm:$0xff]  ;;  %448 = vmatpush.msra.mxu0 %v2617_v0  ;;  %v2980_v15 = vld [vmem:[%s2958_s30 + $0x29] sm:$0xff]  ;;  %v372_v21 = vld [vmem:[%s2958_s30 + $0x31] sm:$0xff]  ;;  %327 = vst.msk [vmem:[#allocation2 + $0xa8] sm:$0xff] %vm321_vm1, %v2871_v57 }
  0x12   : > { %694 = vmatpush.msrb.mxu2 %v2650_v6  ;;  %v2964_v11 = vld [vmem:[%s2958_s30 + $0x41] sm:$0xff]  ;;  %562 = vmatpush.msrb.mxu1 %v364_v9  ;;  %v2983_v16 = vld [vmem:[%s2958_s30 + $0x49] sm:$0xff]  ;;  %v3004_v22 = vld [vmem:[%s2958_s30 + $0x51] sm:$0xff]  ;;  %328 = vst.msk [vmem:[#allocation2 + $0xb0] sm:$0xff] %vm321_vm1, %v2871_v57 }
  0x13   : > { %v2967_v12 = vld [vmem:[%s2958_s30 + $0x61] sm:$0xff]  ;;  %842 = vmatpush.msrb.mxu3 %v2668_v8  ;;  %2622 = vmatmul.msk.f32.vlgmr.msra.gmra.mxu1 %vm385_vm0, %v2961_v10  ;;  %v2987_v17 = vld [vmem:[%s2958_s30 + $0x69] sm:$0xff]  ;;  %v3008_v23 = vld [vmem:[%s2958_s30 + $0x71] sm:$0xff] }
  0x14   : > { %2626 = vmatmul.msk.f32.vlgmr.msra.gmra.mxu2 %vm385_vm0, %v2964_v11  ;;  %2630 = vmatmul.msk.f32.vlgmr.msra.gmra.mxu3 %vm385_vm0, %v2967_v12  ;;  %v366_v14 = vld [vmem:[%s2958_s30 + $0x1] sm:$0xff]  ;;  %v367_v19 = vld [vmem:[%s2958_s30 + $0x9] sm:$0xff]  ;;  %v760_v26 = vld [vmem:[%s2958_s30 + $0x11] sm:$0xff] }
  0x15   : > { %2858 = vset.pattern.permute.xlu1 %v2870_v5  ;;  %2859 = vset.pattern.permute.xlu2 %v2870_v5  ;;  %v373_v27 = vld [vmem:[%s2958_s30 + $0x39] sm:$0xff]  ;;  %v612_v34 = vld [vmem:[%s2958_s30 + $0x10] sm:$0xff]  ;;  %v349_v37 = vld [vmem:[%s2958_s30 + $0x8] sm:$0xff] }
  0x16   : > { %449 = vmatpush.msra.mxu0 %v2616_v1  ;;  %955 = vperm.xlu1 %2858, %v332_v18   ;;  %v3024_v28 = vld [vmem:[%s2958_s30 + $0x59] sm:$0xff]  ;;  %v343_v39 = vld [vmem:[%s3830_s1 + $0x68] sm:$0xff]  ;;  %v616_v44 = vld [vmem:[%s2958_s30 + $0x30] sm:$0xff] }
  0x17   : > { %2618 = vmatmul.msk.f32.vlgmr.msra.gmra.mxu0 %vm385_vm0, %v366_v14  ;;  %950 = vperm.xlu0 %2857, %v331_v13   ;;  %v3028_v29 = vld [vmem:[%s2958_s30 + $0x79] sm:$0xff]  ;;  %v615_v42 = vld [vmem:[%s2958_s30 + $0x28] sm:$0xff]  ;;  %v344_v49 = vld [vmem:[%s3830_s1 + $0x70] sm:$0xff] }
  0x18   : > { %v761_v32 = vld [vmem:[%s2958_s30 + $0x19] sm:$0xff]  ;;  %v335_v43 = vld [vmem:[%s3830_s1 + $0x28] sm:$0xff]  ;;  %v620_v51 = vld [vmem:[%s2958_s30 + $0x50] sm:$0xff] }
  0x19   : > { %v348_v33 = vld [vmem:[%s2958_s30] sm:$0xff]  ;;  %v613_v38 = vld [vmem:[%s2958_s30 + $0x18] sm:$0xff]  ;;  %v619_v50 = vld [vmem:[%s2958_s30 + $0x48] sm:$0xff] }
  0x1a   : > { %v614_v40 = vld [vmem:[%s2958_s30 + $0x20] sm:$0xff]  ;;  %v617_v46 = vld [vmem:[%s2958_s30 + $0x38] sm:$0xff]  ;;  %v2686_v53 = vld [vmem:[%s3833_s4 + $0x8] sm:$0xff] }
  0x1b   : > { %2623 = vmatmul.msk.f32.gmra.mxu1 %vm385_vm0, %v2980_v15  ;;  %v334_v41 = vld [vmem:[%s3830_s1 + $0x20] sm:$0xff]  ;;  %v341_v47 = vld [vmem:[%s3830_s1 + $0x58] sm:$0xff]  ;;  %1153 = vmatpush.msrb.mxu0 %v2686_v53  ;;  %v623_v55 = vld [vmem:[%s2958_s30 + $0x68] sm:$0xff] }
  0x1c   : > { %2627 = vmatmul.msk.f32.gmra.mxu2 %vm385_vm0, %v2983_v16  ;;  %2631 = vmatmul.msk.f32.gmra.mxu3 %vm385_vm0, %v2987_v17  ;;  %v338_v45 = vld [vmem:[%s3830_s1 + $0x40] sm:$0xff]  ;;  %v621_v52 = vld [vmem:[%s2958_s30 + $0x58] sm:$0xff]  ;;  %v2719_v56 = vld [vmem:[%s3833_s4 + $0x10] sm:$0xff] }
  0x1d   : > { %965 = vperm.xlu2 %2859, %v334_v41   ;;  %v618_v48 = vld [vmem:[%s2958_s30 + $0x40] sm:$0xff]  ;;  %1397 = vmatpush.msra.mxu2 %v2719_v56  ;;  %v624_v59 = vld [vmem:[%s2958_s30 + $0x70] sm:$0xff]  ;;  %v2736_v60 = vld [vmem:[%s3833_s4 + $0x18] sm:$0xff] }
  0x1e   : > { %960 = vperm.xlu1 %2858, %v333_v24   ;;  %v622_v54 = vld [vmem:[%s2958_s30 + $0x60] sm:$0xff]  ;;  %1544 = vmatpush.msra.mxu3 %v2736_v60  ;;  %v625_v1 = vld [vmem:[%s2958_s30 + $0x78] sm:$0xff]  ;;  %v1072_v2 = vld [vmem:[#allocation2 + $0x10] sm:$0xff] }
  0x1f   : > { %2619 = vmatmul.msk.f32.gmra.mxu0 %vm385_vm0, %v367_v19  ;;  %975 = vperm.xlu0 %2857, %v336_v20   ;;  %v1071_v61 = vld [vmem:[%s3833_s4] sm:$0xff]  ;;  %v1073_v7 = vld [vmem:[#allocation2 + $0x18] sm:$0xff]  ;;  %v627_v13 = vld [vmem:[%s2958_s30 + $0x88] sm:$0xff] }
  0x20   : > { %1266 = vmatpush.msra.mxu1 %v1071_v61  ;;  %v626_v6 = vld [vmem:[%s2958_s30 + $0x80] sm:$0xff]  ;;  %v775_v14 = vld [vmem:[%s2958_s30 + $0x89] sm:$0xff]  ;;  %v1316_v19 = vld [vmem:[#allocation2 + $0x11] sm:$0xff] }
  0x21   : > { %v774_v8 = vld [vmem:[%s2958_s30 + $0x81] sm:$0xff]  ;;  %v1055_v20 = vld [vmem:[#allocation2 + $0xf] sm:$0xff] }
  0x22   : > { %v2753_v9 = vld [vmem:[%s3833_s4 + $0x20] sm:$0xff] }
  0x23   : > { %2624 = vmatmul.msk.f32.gmra.mxu1 %vm385_vm0, %v372_v21  ;;  %1691 = vmatpush.msra.mxu0 %v2753_v9 }
  0x24   : > { %2628 = vmatmul.msk.f32.gmra.mxu2 %vm385_vm0, %v3004_v22  ;;  %2632 = vmatmul.msk.f32.gmra.mxu3 %vm385_vm0, %v3008_v23 }
  0x25   : > { %970 = vperm.xlu2 %2859, %v335_v43  }
  0x26   : > { %980 = vperm.xlu1 %2858, %v337_v30  }
  0x27   : > { %2620 = vmatmul.msk.f32.gmra.mxu0 %vm385_vm0, %v760_v26  ;;  %990 = vperm.xlu0 %2857, %v339_v25  }
  0x2b   : > { %2625 = vmatmul.msk.f32.gmra.mxu1 %vm385_vm0, %v373_v27 }
  0x2c   : > { %2629 = vmatmul.msk.f32.gmra.mxu2 %vm385_vm0, %v3024_v28  ;;  %2633 = vmatmul.msk.f32.gmra.mxu3 %vm385_vm0, %v3028_v29 }
  0x2d   : > { %985 = vperm.xlu2 %2859, %v338_v45  }
  0x2e   : > { %995 = vperm.xlu1 %2858, %v340_v35  }
  0x2f   : > { %2621 = vmatmul.msk.f32.gmra.mxu0 %vm385_vm0, %v761_v32  ;;  %1005 = vperm.xlu0 %2857, %v342_v31  }
  0x33   : > { %2634 = vmatmul.msk.f32.vlgmr.msrb.gmra.mxu1 %vm385_vm0, %v348_v33 }
  0x34   : > { %2652 = vmatmul.msk.f32.vlgmr.msrb.gmra.mxu2 %vm385_vm0, %v612_v34  ;;  %2670 = vmatmul.msk.f32.vlgmr.msrb.gmra.mxu3 %vm385_vm0, %v760_v26  ;;  %v3197_v26 = vld [vmem:[%s3832_s3] ss:$0 sm:$0xff] }
  0x35   : > { %1000 = vperm.xlu2 %2859, %v341_v47  }
  0x36   : > { %1010 = vperm.xlu1 %2858, %v343_v39  }
  0x37   : > { %1020 = vperm.xlu0 %2857, %v345_v36   ;;  %2687 = vmatmul.msk.f32.vlgmr.msrb.gmra.mxu0 %vm321_vm1, %v1072_v2 }
  0x3b   : > { %2635 = vmatmul.msk.f32.gmra.mxu1 %vm385_vm0, %v349_v37 }
  0x3c   : > { %2653 = vmatmul.msk.f32.gmra.mxu2 %vm385_vm0, %v613_v38  ;;  %2671 = vmatmul.msk.f32.gmra.mxu3 %vm385_vm0, %v761_v32 }
  0x3d   : > { %1015 = vperm.xlu2 %2859, %v344_v49  }
  0x3f   : > { %2688 = vmatmul.msk.f32.gmra.mxu0 %vm321_vm1, %v1073_v7 }
  0x43   : > { %2636 = vmatmul.msk.f32.gmra.mxu1 %vm385_vm0, %v612_v34 }
  0x44   : > { %2654 = vmatmul.msk.f32.gmra.mxu2 %vm385_vm0, %v614_v40  ;;  %2672 = vmatmul.msk.f32.gmra.mxu3 %vm385_vm0, %v2961_v10 }
  0x4b   : > { %2637 = vmatmul.msk.f32.gmra.mxu1 %vm385_vm0, %v613_v38 }
  0x4c   : > { %2655 = vmatmul.msk.f32.gmra.mxu2 %vm385_vm0, %v615_v42  ;;  %2673 = vmatmul.msk.f32.gmra.mxu3 %vm385_vm0, %v2980_v15 }
  0x53   : > { %2638 = vmatmul.msk.f32.gmra.mxu1 %vm385_vm0, %v614_v40 }
  0x54   : > { %2656 = vmatmul.msk.f32.gmra.mxu2 %vm385_vm0, %v616_v44  ;;  %2674 = vmatmul.msk.f32.gmra.mxu3 %vm385_vm0, %v372_v21 }
  0x5b   : > { %2639 = vmatmul.msk.f32.gmra.mxu1 %vm385_vm0, %v615_v42 }
  0x5c   : > { %2657 = vmatmul.msk.f32.gmra.mxu2 %vm385_vm0, %v617_v46  ;;  %2675 = vmatmul.msk.f32.gmra.mxu3 %vm385_vm0, %v373_v27 }
  0x63   : > { %2640 = vmatmul.msk.f32.gmra.mxu1 %vm385_vm0, %v616_v44 }
  0x64   : > { %2658 = vmatmul.msk.f32.gmra.mxu2 %vm385_vm0, %v618_v48  ;;  %2676 = vmatmul.msk.f32.gmra.mxu3 %vm385_vm0, %v2964_v11 }
  0x6b   : > { %2641 = vmatmul.msk.f32.gmra.mxu1 %vm385_vm0, %v617_v46 }
  0x6c   : > { %2659 = vmatmul.msk.f32.gmra.mxu2 %vm385_vm0, %v619_v50  ;;  %2677 = vmatmul.msk.f32.gmra.mxu3 %vm385_vm0, %v2983_v16 }
  0x73   : > { %2642 = vmatmul.msk.f32.gmra.mxu1 %vm385_vm0, %v618_v48 }
  0x74   : > { %2660 = vmatmul.msk.f32.gmra.mxu2 %vm385_vm0, %v620_v51  ;;  %2678 = vmatmul.msk.f32.gmra.mxu3 %vm385_vm0, %v3004_v22 }
  0x7b   : > { %2643 = vmatmul.msk.f32.gmra.mxu1 %vm385_vm0, %v619_v50 }
  0x7c   : > { %2661 = vmatmul.msk.f32.gmra.mxu2 %vm385_vm0, %v621_v52  ;;  %2679 = vmatmul.msk.f32.gmra.mxu3 %vm385_vm0, %v3024_v28  ;;  %v1056_v28 = vld [vmem:[#allocation2 + $0x17] sm:$0xff] }
  0x81   : > { %v3201_v32 = vpop.permute.xlu0 %945 }
  0x83   : > { %2644 = vmatmul.msk.f32.gmra.mxu1 %vm385_vm0, %v620_v51 }
  0x84   : > { %2662 = vmatmul.msk.f32.gmra.mxu2 %vm385_vm0, %v622_v54  ;;  %2680 = vmatmul.msk.f32.gmra.mxu3 %vm385_vm0, %v2967_v12 }
  0x88   : > { %v3218_v57 = vpop.permute.xlu1 %955 }
  0x89   : > { %v3206_v44 = vpop.permute.xlu0 %950 }
  0x8b   : > { %2645 = vmatmul.msk.f32.gmra.mxu1 %vm385_vm0, %v621_v52 }
  0x8c   : > { %2663 = vmatmul.msk.f32.gmra.mxu2 %vm385_vm0, %v623_v55  ;;  %2681 = vmatmul.msk.f32.gmra.mxu3 %vm385_vm0, %v2987_v17 }
  0x90   : > { %v3133_v58 = vpop.f32.mrf.mxu1 }
  0x93   : > { %2646 = vmatmul.msk.f32.gmra.mxu1 %vm385_vm0, %v622_v54 }
  0x94   : > { %2664 = vmatmul.msk.f32.gmra.mxu2 %vm385_vm0, %v624_v59  ;;  %2682 = vmatmul.msk.f32.gmra.mxu3 %vm385_vm0, %v3008_v23  ;;  %v451_v15 = vpop.f32.mrf.mxu0 }
  0x97   : > { %v3150_v62 = vpop.f32.mrf.mxu2  ;;  %v3152_v63 = vpop.f32.mrf.mxu3 }
  0x98   : > { %v3154_v0 = vpop.f32.mrf.mxu1 }
  0x9b   : > { %2647 = vmatmul.msk.f32.gmra.mxu1 %vm385_vm0, %v623_v55 }
  0x9c   : > { %2665 = vmatmul.msk.f32.gmra.mxu2 %vm385_vm0, %v625_v1  ;;  %2683 = vmatmul.msk.f32.gmra.mxu3 %vm385_vm0, %v3028_v29  ;;  %v454_v22 = vpop.f32.mrf.mxu0 }
  0x9f   : > { %v3162_v3 = vpop.f32.mrf.mxu2  ;;  %v3164_v4 = vpop.f32.mrf.mxu3 }
  0xa0   : > { %v3166_v5 = vpop.f32.mrf.mxu1 }
  0xa3   : > { %2648 = vmatmul.msk.f32.gmra.mxu1 %vm385_vm0, %v624_v59 }
  0xa4   : > { %2666 = vmatmul.msk.f32.gmra.mxu2 %vm385_vm0, %v626_v6  ;;  %2684 = vmatmul.msk.f32.gmra.mxu3 %vm385_vm0, %v774_v8  ;;  %v457_v35 = vpop.f32.mrf.mxu0 }
  0xa7   : > { %v3177_v10 = vpop.f32.mrf.mxu2  ;;  %v3179_v11 = vpop.f32.mrf.mxu3 }
  0xa8   : > { %v3181_v12 = vpop.f32.mrf.mxu1 }
  0xab   : > { %2649 = vmatmul.msk.f32.gmra.mxu1 %vm385_vm0, %v625_v1 }
  0xac   : > { %2667 = vmatmul.msk.f32.gmra.mxu2 %vm385_vm0, %v627_v13  ;;  %2685 = vmatmul.msk.f32.gmra.mxu3 %vm385_vm0, %v775_v14  ;;  %v460_v53 = vpop.f32.mrf.mxu0 }
  0xaf   : > { %v3188_v16 = vpop.f32.mrf.mxu2  ;;  %v3190_v17 = vpop.f32.mrf.mxu3 }
  0xb0   : > { %v564_v18 = vpop.f32.mrf.mxu1 }
  0xb1   : > { %v565_v21 = vadd.f32 %v564_v18, %v451_v15 }
  0xb3   : > { %2703 = vmatmul.msk.f32.vlgmr.msra.gmra.mxu1 %vm321_vm1, %v1055_v20 }
  0xb4   : > { %2720 = vmatmul.msk.f32.vlgmr.msra.gmra.mxu2 %vm321_vm1, %v1316_v19  ;;  %v3234_v19 = vpop.permute.xlu1 %960 }
  0xb7   : > { %v696_v23 = vpop.f32.mrf.mxu2  ;;  %v844_v25 = vpop.f32.mrf.mxu3 }
  0xb8   : > { %v744_v24 = vadd.f32 %v696_v23, %v565_v21  ;;  %v567_v27 = vpop.f32.mrf.mxu1 }
  0xb9   : > { %v568_v31 = vadd.f32 %v567_v27, %v454_v22 }
  0xba   : > { %v892_v29 = vadd.f32 %v844_v25, %v744_v24 }
  0xbb   : > { %2704 = vmatmul.msk.f32.gmra.mxu1 %vm321_vm1, %v1056_v28 }
  0xbc   : > { %v911_v30 = vadd.f32 %v3197_v26, %v892_v29 }
  0xbe   : > { %v927_v33 = vmax.f32 %v911_v30, 0.0  ;;  %v3253_v30 = vpop.permute.xlu2 %965 }
  0xbf   : > { %v699_v34 = vpop.f32.mrf.mxu2  ;;  %v847_v38 = vpop.f32.mrf.mxu3 }
  0xc0   : > { %v1023_v36 = vmul.f32 %v3201_v32, %v927_v33  ;;  %v745_v37 = vadd.f32 %v699_v34, %v568_v31  ;;  %v570_v39 = vpop.f32.mrf.mxu1 }
  0xc1   : > { %v571_v42 = vadd.f32 %v570_v39, %v457_v35 }
  0xc2   : > { %1039 = vst.msk [vmem:[#allocation2 + $0x20] sm:$0xff] %vm321_vm1, %v1023_v36  ;;  %v893_v40 = vadd.f32 %v847_v38, %v745_v37 }
  0xc4   : > { %v912_v41 = vadd.f32 %v3197_v26, %v893_v40 }
  0xc6   : > { %v928_v43 = vmax.f32 %v912_v41, 0.0 }
  0xc7   : > { %v702_v45 = vpop.f32.mrf.mxu2  ;;  %v850_v48 = vpop.f32.mrf.mxu3 }
  0xc8   : > { %v1024_v46 = vmul.f32 %v3206_v44, %v928_v43  ;;  %v746_v47 = vadd.f32 %v702_v45, %v571_v42  ;;  %v573_v49 = vpop.f32.mrf.mxu1 }
  0xc9   : > { %v3209_v50 = vld [vmem:[#allocation2 + $0x20] sm:$0xff]  ;;  %v574_v56 = vadd.f32 %v573_v49, %v460_v53 }
  0xca   : > { %v1057_v51 = vld [vmem:[#allocation2 + $0x1f] sm:$0xff]  ;;  %1040 = vst.msk [vmem:[#allocation2 + $0x28] sm:$0xff] %vm321_vm1, %v1024_v46  ;;  %v894_v54 = vadd.f32 %v850_v48, %v746_v47  ;;  %2689 = vmatmul.msk.f32.gmra.mxu0 %vm321_vm1, %v3209_v50  ;;  %v3274_v46 = vpop.permute.xlu2 %970 }
  0xcb   : > { %v1317_v52 = vld [vmem:[#allocation2 + $0x19] sm:$0xff]  ;;  %2705 = vmatmul.msk.f32.gmra.mxu1 %vm321_vm1, %v1057_v51  ;;  %2737 = vmatmul.msk.f32.vlgmr.msra.gmra.mxu3 %vm321_vm1, %v1057_v51 }
  0xcc   : > { %2721 = vmatmul.msk.f32.gmra.mxu2 %vm321_vm1, %v1317_v52  ;;  %v913_v55 = vadd.f32 %v3197_v26, %v894_v54 }
  0xce   : > { %v929_v59 = vmax.f32 %v913_v55, 0.0 }
  0xcf   : > { %v705_v60 = vpop.f32.mrf.mxu2  ;;  %v853_v2 = vpop.f32.mrf.mxu3 }
  0xd0   : > { %v1025_v61 = vmul.f32 %v3218_v57, %v929_v59  ;;  %v747_v1 = vadd.f32 %v705_v60, %v574_v56  ;;  %v576_v6 = vpop.f32.mrf.mxu1 }
  0xd1   : > { %v3221_v7 = vld [vmem:[#allocation2 + $0x28] sm:$0xff]  ;;  %v577_v15 = vadd.f32 %v576_v6, %v3133_v58 }
  0xd2   : > { %v1058_v8 = vld [vmem:[#allocation2 + $0x27] sm:$0xff]  ;;  %1041 = vst.msk [vmem:[#allocation2 + $0x30] sm:$0xff] %vm321_vm1, %v1025_v61  ;;  %v895_v13 = vadd.f32 %v853_v2, %v747_v1  ;;  %2690 = vmatmul.msk.f32.gmra.mxu0 %vm321_vm1, %v3221_v7  ;;  %v3294_v61 = vpop.permute.xlu0 %975 }
  0xd3   : > { %v3223_v9 = vld [vmem:[#allocation2 + $0x21] sm:$0xff]  ;;  %2706 = vmatmul.msk.f32.gmra.mxu1 %vm321_vm1, %v1058_v8  ;;  %2738 = vmatmul.msk.f32.gmra.mxu3 %vm321_vm1, %v1058_v8 }
  0xd4   : > { %2722 = vmatmul.msk.f32.gmra.mxu2 %vm321_vm1, %v3223_v9  ;;  %v914_v14 = vadd.f32 %v3197_v26, %v895_v13 }
  0xd6   : > { %v930_v18 = vmax.f32 %v914_v14, 0.0 }
  0xd7   : > { %v708_v20 = vpop.f32.mrf.mxu2  ;;  %v856_v23 = vpop.f32.mrf.mxu3 }
  0xd8   : > { %v1026_v21 = vmul.f32 %v3234_v19, %v930_v18  ;;  %v748_v22 = vadd.f32 %v708_v20, %v577_v15  ;;  %v579_v24 = vpop.f32.mrf.mxu1 }
  0xd9   : > { %v3237_v25 = vld [vmem:[#allocation2 + $0x30] sm:$0xff]  ;;  %v580_v31 = vadd.f32 %v579_v24, %v3154_v0 }
  0xda   : > { %v3239_v27 = vld [vmem:[#allocation2 + $0x2f] sm:$0xff]  ;;  %1042 = vst.msk [vmem:[#allocation2 + $0x38] sm:$0xff] %vm321_vm1, %v1026_v21  ;;  %v896_v29 = vadd.f32 %v856_v23, %v748_v22  ;;  %2691 = vmatmul.msk.f32.gmra.mxu0 %vm321_vm1, %v3237_v25  ;;  %v3314_v23 = vpop.permute.xlu1 %980 }
  0xdb   : > { %v3241_v28 = vld [vmem:[#allocation2 + $0x29] sm:$0xff]  ;;  %2707 = vmatmul.msk.f32.gmra.mxu1 %vm321_vm1, %v3239_v27  ;;  %2739 = vmatmul.msk.f32.gmra.mxu3 %vm321_vm1, %v3239_v27 }
  0xdc   : > { %2723 = vmatmul.msk.f32.gmra.mxu2 %vm321_vm1, %v3241_v28  ;;  %v915_v58 = vadd.f32 %v3197_v26, %v896_v29 }
  0xde   : > { %v931_v33 = vmax.f32 %v915_v58, 0.0 }
  0xdf   : > { %v711_v34 = vpop.f32.mrf.mxu2  ;;  %v859_v37 = vpop.f32.mrf.mxu3 }
  0xe0   : > { %v1027_v35 = vmul.f32 %v3253_v30, %v931_v33  ;;  %v749_v36 = vadd.f32 %v711_v34, %v580_v31  ;;  %v582_v38 = vpop.f32.mrf.mxu1 }
  0xe1   : > { %v3257_v39 = vld [vmem:[#allocation2 + $0x38] sm:$0xff]  ;;  %v583_v43 = vadd.f32 %v582_v38, %v3166_v5 }
  0xe2   : > { %v3259_v40 = vld [vmem:[#allocation2 + $0x37] sm:$0xff]  ;;  %1043 = vst.msk [vmem:[#allocation2 + $0x40] sm:$0xff] %vm321_vm1, %v1027_v35  ;;  %v897_v42 = vadd.f32 %v859_v37, %v749_v36  ;;  %2692 = vmatmul.msk.f32.gmra.mxu0 %vm321_vm1, %v3257_v39 }
  0xe3   : > { %v3261_v41 = vld [vmem:[#allocation2 + $0x31] sm:$0xff]  ;;  %2708 = vmatmul.msk.f32.gmra.mxu1 %vm321_vm1, %v3259_v40  ;;  %2740 = vmatmul.msk.f32.gmra.mxu3 %vm321_vm1, %v3259_v40 }
  0xe4   : > { %2724 = vmatmul.msk.f32.gmra.mxu2 %vm321_vm1, %v3261_v41  ;;  %v916_v0 = vadd.f32 %v3197_v26, %v897_v42 }
  0xe6   : > { %v932_v45 = vmax.f32 %v916_v0, 0.0  ;;  %v3334_v0 = vpop.permute.xlu2 %985 }
  0xe7   : > { %v714_v47 = vpop.f32.mrf.mxu2  ;;  %v862_v51 = vpop.f32.mrf.mxu3 }
  0xe8   : > { %v1028_v48 = vmul.f32 %v3274_v46, %v932_v45  ;;  %v750_v49 = vadd.f32 %v714_v47, %v583_v43  ;;  %v585_v52 = vpop.f32.mrf.mxu1 }
  0xe9   : > { %v3277_v53 = vld [vmem:[#allocation2 + $0x40] sm:$0xff]  ;;  %v586_v59 = vadd.f32 %v585_v52, %v3181_v12 }
  0xea   : > { %v3279_v54 = vld [vmem:[#allocation2 + $0x3f] sm:$0xff]  ;;  %1044 = vst.msk [vmem:[#allocation2 + $0x48] sm:$0xff] %vm321_vm1, %v1028_v48  ;;  %v898_v56 = vadd.f32 %v862_v51, %v750_v49  ;;  %2693 = vmatmul.msk.f32.gmra.mxu0 %vm321_vm1, %v3277_v53 }
  0xeb   : > { %v3281_v55 = vld [vmem:[#allocation2 + $0x39] sm:$0xff]  ;;  %2709 = vmatmul.msk.f32.gmra.mxu1 %vm321_vm1, %v3279_v54  ;;  %2741 = vmatmul.msk.f32.gmra.mxu3 %vm321_vm1, %v3279_v54 }
  0xec   : > { %2725 = vmatmul.msk.f32.gmra.mxu2 %vm321_vm1, %v3281_v55  ;;  %v917_v5 = vadd.f32 %v3197_v26, %v898_v56 }
  0xee   : > { %v933_v60 = vmax.f32 %v917_v5, 0.0 }
  0xef   : > { %v717_v1 = vpop.f32.mrf.mxu2  ;;  %v865_v8 = vpop.f32.mrf.mxu3 }
  0xf0   : > { %v1029_v2 = vmul.f32 %v3294_v61, %v933_v60  ;;  %v751_v6 = vadd.f32 %v717_v1, %v586_v59  ;;  %v588_v13 = vpop.f32.mrf.mxu1  ;;  %v3354_v1 = vpop.permute.xlu0 %990 }
  0xf1   : > { %v3297_v14 = vld [vmem:[#allocation2 + $0x48] sm:$0xff]  ;;  %v589_v21 = vadd.f32 %v588_v13, %v3150_v62 }
  0xf2   : > { %v3299_v15 = vld [vmem:[#allocation2 + $0x47] sm:$0xff]  ;;  %1045 = vst.msk [vmem:[#allocation2 + $0x50] sm:$0xff] %vm321_vm1, %v1029_v2  ;;  %v899_v20 = vadd.f32 %v865_v8, %v751_v6  ;;  %2694 = vmatmul.msk.f32.gmra.mxu0 %vm321_vm1, %v3297_v14 }
  0xf3   : > { %v3301_v18 = vld [vmem:[#allocation2 + $0x41] sm:$0xff]  ;;  %2710 = vmatmul.msk.f32.gmra.mxu1 %vm321_vm1, %v3299_v15  ;;  %2742 = vmatmul.msk.f32.gmra.mxu3 %vm321_vm1, %v3299_v15 }
  0xf4   : > { %2726 = vmatmul.msk.f32.gmra.mxu2 %vm321_vm1, %v3301_v18  ;;  %v918_v12 = vadd.f32 %v3197_v26, %v899_v20 }
  0xf6   : > { %v934_v22 = vmax.f32 %v918_v12, 0.0 }
  0xf7   : > { %v720_v24 = vpop.f32.mrf.mxu2  ;;  %v868_v31 = vpop.f32.mrf.mxu3 }
  0xf8   : > { %v1030_v29 = vmul.f32 %v3314_v23, %v934_v22  ;;  %v752_v58 = vadd.f32 %v720_v24, %v589_v21  ;;  %v591_v33 = vpop.f32.mrf.mxu1 }
  0xf9   : > { %v3317_v34 = vld [vmem:[#allocation2 + $0x50] sm:$0xff]  ;;  %v592_v38 = vadd.f32 %v591_v33, %v3162_v3 }
  0xfa   : > { %v3319_v35 = vld [vmem:[#allocation2 + $0x4f] sm:$0xff]  ;;  %1046 = vst.msk [vmem:[#allocation2 + $0x58] sm:$0xff] %vm321_vm1, %v1030_v29  ;;  %v900_v37 = vadd.f32 %v868_v31, %v752_v58  ;;  %2695 = vmatmul.msk.f32.gmra.mxu0 %vm321_vm1, %v3317_v34  ;;  %v3374_v31 = vpop.permute.xlu1 %995 }
  0xfb   : > { %v3321_v36 = vld [vmem:[#allocation2 + $0x49] sm:$0xff]  ;;  %2711 = vmatmul.msk.f32.gmra.mxu1 %vm321_vm1, %v3319_v35  ;;  %2743 = vmatmul.msk.f32.gmra.mxu3 %vm321_vm1, %v3319_v35 }
  0xfc   : > { %2727 = vmatmul.msk.f32.gmra.mxu2 %vm321_vm1, %v3321_v36  ;;  %v919_v62 = vadd.f32 %v3197_v26, %v900_v37 }
  0xfe   : > { %v935_v42 = vmax.f32 %v919_v62, 0.0 }
  0xff   : > { %v723_v43 = vpop.f32.mrf.mxu2  ;;  %v871_v48 = vpop.f32.mrf.mxu3 }
 0x100   : > { %v1031_v45 = vmul.f32 %v3334_v0, %v935_v42  ;;  %v753_v47 = vadd.f32 %v723_v43, %v592_v38  ;;  %v594_v49 = vpop.f32.mrf.mxu1 }
 0x101   : > { %v3337_v51 = vld [vmem:[#allocation2 + $0x58] sm:$0xff]  ;;  %v595_v59 = vadd.f32 %v594_v49, %v3177_v10 }
 0x102   : > { %v3339_v52 = vld [vmem:[#allocation2 + $0x57] sm:$0xff]  ;;  %1047 = vst.msk [vmem:[#allocation2 + $0x60] sm:$0xff] %vm321_vm1, %v1031_v45  ;;  %v901_v5 = vadd.f32 %v871_v48, %v753_v47  ;;  %2696 = vmatmul.msk.f32.gmra.mxu0 %vm321_vm1, %v3337_v51 }
 0x103   : > { %v3341_v56 = vld [vmem:[#allocation2 + $0x51] sm:$0xff]  ;;  %2712 = vmatmul.msk.f32.gmra.mxu1 %vm321_vm1, %v3339_v52  ;;  %2744 = vmatmul.msk.f32.gmra.mxu3 %vm321_vm1, %v3339_v52 }
 0x104   : > { %2728 = vmatmul.msk.f32.gmra.mxu2 %vm321_vm1, %v3341_v56  ;;  %v920_v3 = vadd.f32 %v3197_v26, %v901_v5 }
 0x106   : > { %v936_v60 = vmax.f32 %v920_v3, 0.0 }
 0x107   : > { %v726_v2 = vpop.f32.mrf.mxu2  ;;  %v874_v13 = vpop.f32.mrf.mxu3 }
 0x108   : > { %v1032_v6 = vmul.f32 %v3354_v1, %v936_v60  ;;  %v754_v8 = vadd.f32 %v726_v2, %v595_v59  ;;  %v597_v20 = vpop.f32.mrf.mxu1  ;;  %v3397_v59 = vpop.permute.xlu2 %1000 }
 0x109   : > { %v3357_v12 = vld [vmem:[#allocation2 + $0x60] sm:$0xff]  ;;  %v598_v29 = vadd.f32 %v597_v20, %v3188_v16  ;;  %v2787_v16 = vld [vmem:[%s3833_s4 + $0x30] sm:$0xff]  ;;  %3843 = vst [vmem:[#allocation3_spill] sm:$0xff] %v3397_v59 }
 0x10a   : > { %v3359_v21 = vld [vmem:[#allocation2 + $0x5f] sm:$0xff]  ;;  %1048 = vst.msk [vmem:[#allocation2 + $0x68] sm:$0xff] %vm321_vm1, %v1032_v6  ;;  %v902_v24 = vadd.f32 %v874_v13, %v754_v8  ;;  %2697 = vmatmul.msk.f32.gmra.mxu0 %vm321_vm1, %v3357_v12  ;;  %1985 = vmatpush.msrb.mxu2 %v2787_v16 }
 0x10b   : > { %v3361_v22 = vld [vmem:[#allocation2 + $0x59] sm:$0xff]  ;;  %2713 = vmatmul.msk.f32.gmra.mxu1 %vm321_vm1, %v3359_v21  ;;  %2745 = vmatmul.msk.f32.gmra.mxu3 %vm321_vm1, %v3359_v21 }
 0x10c   : > { %2729 = vmatmul.msk.f32.gmra.mxu2 %vm321_vm1, %v3361_v22  ;;  %v921_v10 = vadd.f32 %v3197_v26, %v902_v24 }
 0x10e   : > { %v937_v58 = vmax.f32 %v921_v10, 0.0 }
 0x10f   : > { %v729_v33 = vpop.f32.mrf.mxu2  ;;  %v877_v38 = vpop.f32.mrf.mxu3 }
 0x110   : > { %v1033_v37 = vmul.f32 %v3374_v31, %v937_v58  ;;  %v755_v62 = vadd.f32 %v729_v33, %v598_v29  ;;  %v600_v42 = vpop.f32.mrf.mxu1  ;;  %v2770_v58 = vld [vmem:[%s3833_s4 + $0x28] sm:$0xff]  ;;  %v2821_v33 = vld [vmem:[%s3833_s4 + $0x40] sm:$0xff] }
 0x111   : > { %v3377_v43 = vld [vmem:[#allocation2 + $0x68] sm:$0xff]  ;;  %v601_v5 = vadd.f32 %v600_v42, %v3152_v63  ;;  %v2804_v63 = vld [vmem:[%s3833_s4 + $0x38] sm:$0xff]  ;;  %1838 = vmatpush.msrb.mxu1 %v2770_v58  ;;  %2279 = vmatpush.msrb.mxu0 %v2821_v33  ;;  %v3426_v42 = vpop.permute.xlu0 %1005 }
 0x112   : > { %v3379_v45 = vld [vmem:[#allocation2 + $0x67] sm:$0xff]  ;;  %1049 = vst.msk [vmem:[#allocation2 + $0x70] sm:$0xff] %vm321_vm1, %v1033_v37  ;;  %v903_v48 = vadd.f32 %v877_v38, %v755_v62  ;;  %2698 = vmatmul.msk.f32.gmra.mxu0 %vm321_vm1, %v3377_v43  ;;  %2132 = vmatpush.msrb.mxu3 %v2804_v63  ;;  %v3446_v63 = vpop.permute.xlu1 %1010 }
 0x113   : > { %v3381_v47 = vld [vmem:[#allocation2 + $0x61] sm:$0xff]  ;;  %2714 = vmatmul.msk.f32.gmra.mxu1 %vm321_vm1, %v3379_v45  ;;  %2746 = vmatmul.msk.f32.gmra.mxu3 %vm321_vm1, %v3379_v45  ;;  %3844 = vst [vmem:[#allocation4_spill] sm:$0xff] %v3426_v42 }
 0x114   : > { %2730 = vmatmul.msk.f32.gmra.mxu2 %vm321_vm1, %v3381_v47  ;;  %v922_v49 = vadd.f32 %v3197_v26, %v903_v48  ;;  %3845 = vst [vmem:[#allocation5_spill] sm:$0xff] %v3446_v63 }
 0x116   : > { %v938_v3 = vmax.f32 %v922_v49, 0.0 }
 0x117   : > { %v732_v60 = vpop.f32.mrf.mxu2  ;;  %v880_v8 = vpop.f32.mrf.mxu3 }
 0x118   : > { %v1034_v2 = vmul.f32 %v3397_v59, %v938_v3  ;;  %v756_v6 = vadd.f32 %v732_v60, %v601_v5  ;;  %v603_v13 = vpop.f32.mrf.mxu1 }
 0x119   : > { %v3400_v20 = vld [vmem:[#allocation2 + $0x70] sm:$0xff]  ;;  %v604_v62 = vadd.f32 %v603_v13, %v3164_v4 }
 0x11a   : > { %v3402_v24 = vld [vmem:[#allocation2 + $0x6f] sm:$0xff]  ;;  %1050 = vst.msk [vmem:[#allocation2 + $0x78] sm:$0xff] %vm321_vm1, %v1034_v2  ;;  %v904_v29 = vadd.f32 %v880_v8, %v756_v6  ;;  %2699 = vmatmul.msk.f32.gmra.mxu0 %vm321_vm1, %v3400_v20 }
 0x11b   : > { %v3404_v10 = vld [vmem:[#allocation2 + $0x69] sm:$0xff]  ;;  %2715 = vmatmul.msk.f32.gmra.mxu1 %vm321_vm1, %v3402_v24  ;;  %2747 = vmatmul.msk.f32.gmra.mxu3 %vm321_vm1, %v3402_v24 }
 0x11c   : > { %2731 = vmatmul.msk.f32.gmra.mxu2 %vm321_vm1, %v3404_v10  ;;  %v923_v37 = vadd.f32 %v3197_v26, %v904_v29 }
 0x11e   : > { %v939_v38 = vmax.f32 %v923_v37, 0.0 }
 0x11f   : > { %v735_v48 = vpop.f32.mrf.mxu2  ;;  %v883_v5 = vpop.f32.mrf.mxu3 }
 0x120   : > { %v1035_v16 = vmul.f32 %v3426_v42, %v939_v38  ;;  %v757_v49 = vadd.f32 %v735_v48, %v604_v62  ;;  %v606_v3 = vpop.f32.mrf.mxu1 }
 0x121   : > { %v3429_v60 = vld [vmem:[#allocation2 + $0x78] sm:$0xff]  ;;  %v607_v13 = vadd.f32 %v606_v3, %v3179_v11 }
 0x122   : > { %v3431_v2 = vld [vmem:[#allocation2 + $0x77] sm:$0xff]  ;;  %1051 = vst.msk [vmem:[#allocation2 + $0x80] sm:$0xff] %vm321_vm1, %v1035_v16  ;;  %v905_v8 = vadd.f32 %v883_v5, %v757_v49  ;;  %2700 = vmatmul.msk.f32.gmra.mxu0 %vm321_vm1, %v3429_v60 }
 0x123   : > { %v3433_v6 = vld [vmem:[#allocation2 + $0x71] sm:$0xff]  ;;  %2716 = vmatmul.msk.f32.gmra.mxu1 %vm321_vm1, %v3431_v2  ;;  %2748 = vmatmul.msk.f32.gmra.mxu3 %vm321_vm1, %v3431_v2 }
 0x124   : > { %2732 = vmatmul.msk.f32.gmra.mxu2 %vm321_vm1, %v3433_v6  ;;  %v924_v4 = vadd.f32 %v3197_v26, %v905_v8 }
 0x126   : > { %v940_v29 = vmax.f32 %v924_v4, 0.0  ;;  %v3466_v4 = vpop.permute.xlu2 %1015 }
 0x127   : > { %v738_v58 = vpop.f32.mrf.mxu2  ;;  %v886_v62 = vpop.f32.mrf.mxu3  ;;  %3846 = vst [vmem:[#allocation6_spill] sm:$0xff] %v3466_v4 }
 0x128   : > { %v1036_v33 = vmul.f32 %v3446_v63, %v940_v29  ;;  %v758_v37 = vadd.f32 %v738_v58, %v607_v13  ;;  %v609_v11 = vpop.f32.mrf.mxu1 }
 0x129   : > { %v3449_v38 = vld [vmem:[#allocation2 + $0x80] sm:$0xff]  ;;  %v610_v3 = vadd.f32 %v609_v11, %v3190_v17  ;;  %v3484_v17 = vpop.f32.mrf.mxu0 }
 0x12a   : > { %v3451_v48 = vld [vmem:[#allocation2 + $0x7f] sm:$0xff]  ;;  %1052 = vst.msk [vmem:[#allocation2 + $0x88] sm:$0xff] %vm321_vm1, %v1036_v33  ;;  %v906_v49 = vadd.f32 %v886_v62, %v758_v37  ;;  %2701 = vmatmul.msk.f32.gmra.mxu0 %vm321_vm1, %v3449_v38 }
 0x12b   : > { %v3453_v16 = vld [vmem:[#allocation2 + $0x79] sm:$0xff]  ;;  %2717 = vmatmul.msk.f32.gmra.mxu1 %vm321_vm1, %v3451_v48  ;;  %2749 = vmatmul.msk.f32.gmra.mxu3 %vm321_vm1, %v3451_v48 }
 0x12c   : > { %2733 = vmatmul.msk.f32.gmra.mxu2 %vm321_vm1, %v3453_v16  ;;  %v925_v5 = vadd.f32 %v3197_v26, %v906_v49 }
 0x12e   : > { %v941_v8 = vmax.f32 %v925_v5, 0.0 }
 0x12f   : > { %v741_v13 = vpop.f32.mrf.mxu2  ;;  %v889_v33 = vpop.f32.mrf.mxu3 }
 0x130   : > { %v1037_v29 = vmul.f32 %v3466_v4, %v941_v8  ;;  %v759_v58 = vadd.f32 %v741_v13, %v610_v3  ;;  %v3486_v49 = vpop.f32.mrf.mxu1  ;;  %v3489_v3 = vpop.permute.xlu0 %1020 }
 0x131   : > { %v3469_v37 = vld [vmem:[#allocation2 + $0x88] sm:$0xff]  ;;  %3847 = vst [vmem:[#allocation7_spill] sm:$0xff] %v3489_v3 }
 0x132   : > { %v3471_v62 = vld [vmem:[#allocation2 + $0x87] sm:$0xff]  ;;  %1053 = vst.msk [vmem:[#allocation2 + $0x90] sm:$0xff] %vm321_vm1, %v1037_v29  ;;  %v907_v42 = vadd.f32 %v889_v33, %v759_v58  ;;  %2702 = vmatmul.msk.f32.gmra.mxu0 %vm321_vm1, %v3469_v37 }
 0x133   : > { %v3473_v63 = vld [vmem:[#allocation2 + $0x81] sm:$0xff]  ;;  %2718 = vmatmul.msk.f32.gmra.mxu1 %vm321_vm1, %v3471_v62  ;;  %2750 = vmatmul.msk.f32.gmra.mxu3 %vm321_vm1, %v3471_v62 }
 0x134   : > { %2734 = vmatmul.msk.f32.gmra.mxu2 %vm321_vm1, %v3473_v63  ;;  %v926_v11 = vadd.f32 %v3197_v26, %v907_v42  ;;  %v1158_v26 = vpop.f32.mrf.mxu0 }
 0x136   : > { %v942_v5 = vmax.f32 %v926_v11, 0.0 }
 0x138   : > { %v1038_v8 = vmul.f32 %v3489_v3, %v942_v5  ;;  %v1271_v42 = vpop.f32.mrf.mxu1 }
 0x139   : > { %v3492_v13 = vld [vmem:[#allocation2 + $0x89] sm:$0xff]  ;;  %v1272_v5 = vadd.f32 %v1271_v42, %v1158_v26 }
 0x13a   : > { %v3494_v29 = vld [vmem:[#allocation2 + $0x8f] sm:$0xff]  ;;  %1054 = vst.msk [vmem:[#allocation2 + $0x98] sm:$0xff] %vm321_vm1, %v1038_v8  ;;  %2754 = vmatmul.msk.f32.vlgmr.msra.gmra.mxu0 %vm321_vm1, %v3209_v50  ;;  %v3515_v50 = vpop.f32.mrf.mxu2 }
 0x13b   : > { %2771 = vmatmul.msk.f32.vlgmr.msrb.gmra.mxu1 %vm321_vm1, %v3223_v9  ;;  %2751 = vmatmul.msk.f32.gmra.mxu3 %vm321_vm1, %v3494_v29 }
 0x13c   : > { %2735 = vmatmul.msk.f32.gmra.mxu2 %vm321_vm1, %v3492_v13 }
 0x141   : > { %v3505_v58 = vld [vmem:[#allocation2 + $0x97] sm:$0xff] }
 0x142   : > { %2755 = vmatmul.msk.f32.gmra.mxu0 %vm321_vm1, %v3221_v7 }
 0x143   : > { %2772 = vmatmul.msk.f32.gmra.mxu1 %vm321_vm1, %v3241_v28  ;;  %2752 = vmatmul.msk.f32.gmra.mxu3 %vm321_vm1, %v3505_v58 }
 0x144   : > { %2788 = vmatmul.msk.f32.vlgmr.msrb.gmra.mxu2 %vm321_vm1, %v3239_v27 }
 0x147   : > { %v1161_v9 = vpop.f32.mrf.mxu0 }
 0x148   : > { %v1274_v33 = vpop.f32.mrf.mxu1 }
 0x149   : > { %v1275_v26 = vadd.f32 %v1274_v33, %v1161_v9 }
 0x14a   : > { %2756 = vmatmul.msk.f32.gmra.mxu0 %vm321_vm1, %v3237_v25 }
 0x14b   : > { %2773 = vmatmul.msk.f32.gmra.mxu1 %vm321_vm1, %v3261_v41  ;;  %2805 = vmatmul.msk.f32.vlgmr.msrb.gmra.mxu3 %vm321_vm1, %v3237_v25 }
 0x14c   : > { %2789 = vmatmul.msk.f32.gmra.mxu2 %vm321_vm1, %v3259_v40 }
 0x14e   : > { %v3525_v28 = vpop.f32.mrf.mxu3 }
 0x14f   : > { %v1402_v7 = vpop.f32.mrf.mxu2  ;;  %v1164_v27 = vpop.f32.mrf.mxu0 }
 0x150   : > { %v1277_v11 = vpop.f32.mrf.mxu1  ;;  %v1448_v40 = vadd.f32 %v1402_v7, %v1272_v5 }
 0x151   : > { %v1278_v9 = vadd.f32 %v1277_v11, %v1164_v27 }
 0x152   : > { %2757 = vmatmul.msk.f32.gmra.mxu0 %vm321_vm1, %v3257_v39 }
 0x153   : > { %2774 = vmatmul.msk.f32.gmra.mxu1 %vm321_vm1, %v3281_v55  ;;  %2806 = vmatmul.msk.f32.gmra.mxu3 %vm321_vm1, %v3257_v39 }
 0x154   : > { %2790 = vmatmul.msk.f32.gmra.mxu2 %vm321_vm1, %v3279_v54 }
 0x156   : > { %v1549_v8 = vpop.f32.mrf.mxu3 }
 0x157   : > { %v1405_v25 = vpop.f32.mrf.mxu2  ;;  %v3535_v3 = vadd.f32 %v1549_v8, %v1448_v40  ;;  %v1167_v4 = vpop.f32.mrf.mxu0 }
 0x158   : > { %v1280_v59 = vpop.f32.mrf.mxu1  ;;  %v1449_v39 = vadd.f32 %v1405_v25, %v1275_v26 }
 0x159   : > { %v1281_v27 = vadd.f32 %v1280_v59, %v1167_v4 }
 0x15a   : > { %2758 = vmatmul.msk.f32.gmra.mxu0 %vm321_vm1, %v3277_v53 }
 0x15b   : > { %2775 = vmatmul.msk.f32.gmra.mxu1 %vm321_vm1, %v3301_v18  ;;  %2807 = vmatmul.msk.f32.gmra.mxu3 %vm321_vm1, %v3277_v53 }
 0x15c   : > { %2791 = vmatmul.msk.f32.gmra.mxu2 %vm321_vm1, %v3299_v15 }
 0x15e   : > { %v1552_v42 = vpop.f32.mrf.mxu3 }
 0x15f   : > { %v1408_v54 = vpop.f32.mrf.mxu2  ;;  %v3545_v7 = vadd.f32 %v1552_v42, %v1449_v39  ;;  %v1170_v5 = vpop.f32.mrf.mxu0 }
 0x160   : > { %v1283_v40 = vpop.f32.mrf.mxu1  ;;  %v1450_v53 = vadd.f32 %v1408_v54, %v1278_v9 }
 0x161   : > { %v1284_v59 = vadd.f32 %v1283_v40, %v1170_v5 }
 0x162   : > { %2759 = vmatmul.msk.f32.gmra.mxu0 %vm321_vm1, %v3297_v14 }
 0x163   : > { %2776 = vmatmul.msk.f32.gmra.mxu1 %vm321_vm1, %v3321_v36  ;;  %2808 = vmatmul.msk.f32.gmra.mxu3 %vm321_vm1, %v3297_v14 }
 0x164   : > { %2792 = vmatmul.msk.f32.gmra.mxu2 %vm321_vm1, %v3319_v35 }
 0x166   : > { %v1555_v33 = vpop.f32.mrf.mxu3 }
 0x167   : > { %v1411_v15 = vpop.f32.mrf.mxu2  ;;  %v3555_v25 = vadd.f32 %v1555_v33, %v1450_v53  ;;  %v1173_v8 = vpop.f32.mrf.mxu0 }
 0x168   : > { %v1286_v26 = vpop.f32.mrf.mxu1  ;;  %v1451_v14 = vadd.f32 %v1411_v15, %v1281_v27 }
 0x169   : > { %v1287_v5 = vadd.f32 %v1286_v26, %v1173_v8 }
 0x16a   : > { %2760 = vmatmul.msk.f32.gmra.mxu0 %vm321_vm1, %v3317_v34 }
 0x16b   : > { %2777 = vmatmul.msk.f32.gmra.mxu1 %vm321_vm1, %v3341_v56  ;;  %2809 = vmatmul.msk.f32.gmra.mxu3 %vm321_vm1, %v3317_v34 }
 0x16c   : > { %2793 = vmatmul.msk.f32.gmra.mxu2 %vm321_vm1, %v3339_v52 }
 0x16e   : > { %v1558_v11 = vpop.f32.mrf.mxu3 }
 0x16f   : > { %v1414_v35 = vpop.f32.mrf.mxu2  ;;  %v3565_v39 = vadd.f32 %v1558_v11, %v1451_v14  ;;  %v1176_v54 = vpop.f32.mrf.mxu0 }
 0x170   : > { %v1289_v42 = vpop.f32.mrf.mxu1  ;;  %v1452_v34 = vadd.f32 %v1414_v35, %v1284_v59 }
 0x171   : > { %v1290_v8 = vadd.f32 %v1289_v42, %v1176_v54 }
 0x172   : > { %2761 = vmatmul.msk.f32.gmra.mxu0 %vm321_vm1, %v3337_v51 }
 0x173   : > { %2778 = vmatmul.msk.f32.gmra.mxu1 %vm321_vm1, %v3361_v22  ;;  %2810 = vmatmul.msk.f32.gmra.mxu3 %vm321_vm1, %v3337_v51 }
 0x174   : > { %2794 = vmatmul.msk.f32.gmra.mxu2 %vm321_vm1, %v3359_v21 }
 0x176   : > { %v1561_v4 = vpop.f32.mrf.mxu3 }
 0x177   : > { %v1417_v52 = vpop.f32.mrf.mxu2  ;;  %v3575_v9 = vadd.f32 %v1561_v4, %v1452_v34  ;;  %v1179_v53 = vpop.f32.mrf.mxu0 }
 0x178   : > { %v1292_v15 = vpop.f32.mrf.mxu1  ;;  %v1453_v51 = vadd.f32 %v1417_v52, %v1287_v5 }
 0x17a   : > { %2762 = vmatmul.msk.f32.gmra.mxu0 %vm321_vm1, %v3357_v12 }
 0x17b   : > { %2779 = vmatmul.msk.f32.gmra.mxu1 %vm321_vm1, %v3381_v47  ;;  %2811 = vmatmul.msk.f32.gmra.mxu3 %vm321_vm1, %v3357_v12  ;;  %v1293_v12 = vadd.f32 %v1292_v15, %v1179_v53 }
 0x17c   : > { %2795 = vmatmul.msk.f32.gmra.mxu2 %vm321_vm1, %v3379_v45 }
 0x17e   : > { %v1564_v40 = vpop.f32.mrf.mxu3 }
 0x17f   : > { %v1420_v21 = vpop.f32.mrf.mxu2  ;;  %v3585_v33 = vadd.f32 %v1564_v40, %v1453_v51  ;;  %v1182_v27 = vpop.f32.mrf.mxu0 }
 0x180   : > { %v1295_v14 = vpop.f32.mrf.mxu1  ;;  %v1454_v45 = vadd.f32 %v1420_v21, %v1290_v8 }
 0x182   : > { %2763 = vmatmul.msk.f32.gmra.mxu0 %vm321_vm1, %v3377_v43 }
 0x183   : > { %2780 = vmatmul.msk.f32.gmra.mxu1 %vm321_vm1, %v3404_v10  ;;  %2812 = vmatmul.msk.f32.gmra.mxu3 %vm321_vm1, %v3377_v43  ;;  %v1296_v43 = vadd.f32 %v1295_v14, %v1182_v27 }
 0x184   : > { %2796 = vmatmul.msk.f32.gmra.mxu2 %vm321_vm1, %v3402_v24 }
 0x186   : > { %v1567_v35 = vpop.f32.mrf.mxu3 }
 0x187   : > { %v1423_v26 = vpop.f32.mrf.mxu2  ;;  %v3595_v59 = vadd.f32 %v1567_v35, %v1454_v45  ;;  %v1185_v34 = vpop.f32.mrf.mxu0 }
 0x188   : > { %v1455_v11 = vadd.f32 %v1423_v26, %v1293_v12  ;;  %v1298_v52 = vpop.f32.mrf.mxu1 }
 0x18a   : > { %2764 = vmatmul.msk.f32.gmra.mxu0 %vm321_vm1, %v3400_v20 }
 0x18b   : > { %2781 = vmatmul.msk.f32.gmra.mxu1 %vm321_vm1, %v3433_v6  ;;  %2813 = vmatmul.msk.f32.gmra.mxu3 %vm321_vm1, %v3400_v20  ;;  %v1299_v20 = vadd.f32 %v1298_v52, %v1185_v34 }
 0x18c   : > { %2797 = vmatmul.msk.f32.gmra.mxu2 %vm321_vm1, %v3431_v2 }
 0x18e   : > { %v1570_v54 = vpop.f32.mrf.mxu3 }
 0x18f   : > { %v1426_v24 = vpop.f32.mrf.mxu2  ;;  %v3605_v4 = vadd.f32 %v1570_v54, %v1455_v11  ;;  %v1188_v53 = vpop.f32.mrf.mxu0 }
 0x190   : > { %v1456_v42 = vadd.f32 %v1426_v24, %v1296_v43  ;;  %v1301_v15 = vpop.f32.mrf.mxu1  ;;  %v1624_v43 = vld [vmem:[#allocation2 + $0x90] sm:$0xff] }
 0x191   : > { %v3637_v24 = vld [vmem:[#allocation2 + $0x91] sm:$0xff] }
 0x192   : > { %2765 = vmatmul.msk.f32.gmra.mxu0 %vm321_vm1, %v3429_v60 }
 0x193   : > { %2782 = vmatmul.msk.f32.gmra.mxu1 %vm321_vm1, %v3453_v16  ;;  %2814 = vmatmul.msk.f32.gmra.mxu3 %vm321_vm1, %v3429_v60  ;;  %v1302_v60 = vadd.f32 %v1301_v15, %v1188_v53 }
 0x194   : > { %2798 = vmatmul.msk.f32.gmra.mxu2 %vm321_vm1, %v3451_v48 }
 0x196   : > { %v1573_v5 = vpop.f32.mrf.mxu3 }
 0x197   : > { %v1429_v2 = vpop.f32.mrf.mxu2  ;;  %v3615_v21 = vadd.f32 %v1573_v5, %v1456_v42  ;;  %v1191_v40 = vpop.f32.mrf.mxu0  ;;  %v3645_v5 = vld [vmem:[#allocation2 + $0x99] sm:$0xff] }
 0x198   : > { %v1457_v51 = vadd.f32 %v1429_v2, %v1299_v20  ;;  %v1304_v27 = vpop.f32.mrf.mxu1  ;;  %v1625_v2 = vld [vmem:[#allocation2 + $0x98] sm:$0xff] }
 0x19a   : > { %2766 = vmatmul.msk.f32.gmra.mxu0 %vm321_vm1, %v3449_v38 }
 0x19b   : > { %2783 = vmatmul.msk.f32.gmra.mxu1 %vm321_vm1, %v3473_v63  ;;  %2815 = vmatmul.msk.f32.gmra.mxu3 %vm321_vm1, %v3449_v38  ;;  %v1305_v38 = vadd.f32 %v1304_v27, %v1191_v40 }
 0x19c   : > { %2799 = vmatmul.msk.f32.gmra.mxu2 %vm321_vm1, %v3471_v62 }
 0x19e   : > { %v1576_v14 = vpop.f32.mrf.mxu3 }
 0x19f   : > { %v1432_v48 = vpop.f32.mrf.mxu2  ;;  %v3625_v12 = vadd.f32 %v1576_v14, %v1457_v51  ;;  %v1194_v45 = vpop.f32.mrf.mxu0  ;;  %v1918_v51 = vld [vmem:[#allocation2 + $0x9f] sm:$0xff] }
 0x1a0   : > { %v1458_v8 = vadd.f32 %v1432_v48, %v1302_v60  ;;  %v1307_v62 = vpop.f32.mrf.mxu1 }
 0x1a2   : > { %2767 = vmatmul.msk.f32.gmra.mxu0 %vm321_vm1, %v3469_v37 }
 0x1a3   : > { %2784 = vmatmul.msk.f32.gmra.mxu1 %vm321_vm1, %v3492_v13  ;;  %2816 = vmatmul.msk.f32.gmra.mxu3 %vm321_vm1, %v3469_v37  ;;  %v1308_v37 = vadd.f32 %v1307_v62, %v1194_v45  ;;  %v2065_v45 = vld [vmem:[#allocation2 + $0xa0] sm:$0xff] }
 0x1a4   : > { %2800 = vmatmul.msk.f32.gmra.mxu2 %vm321_vm1, %v3494_v29 }
 0x1a6   : > { %v1579_v35 = vpop.f32.mrf.mxu3 }
 0x1a7   : > { %v1435_v26 = vpop.f32.mrf.mxu2  ;;  %v3635_v34 = vadd.f32 %v1579_v35, %v1458_v8  ;;  %v1197_v52 = vpop.f32.mrf.mxu0  ;;  %v1919_v8 = vld [vmem:[#allocation2 + $0xa7] sm:$0xff] }
 0x1a8   : > { %v1459_v11 = vadd.f32 %v1435_v26, %v1305_v38  ;;  %v1310_v20 = vpop.f32.mrf.mxu1 }
 0x1aa   : > { %2768 = vmatmul.msk.f32.gmra.mxu0 %vm321_vm1, %v1624_v43 }
 0x1ab   : > { %2785 = vmatmul.msk.f32.gmra.mxu1 %vm321_vm1, %v3637_v24  ;;  %2817 = vmatmul.msk.f32.gmra.mxu3 %vm321_vm1, %v1624_v43 }
 0x1ac   : > { %2801 = vmatmul.msk.f32.gmra.mxu2 %vm321_vm1, %v3505_v58  ;;  %v1311_v58 = vadd.f32 %v1310_v20, %v1197_v52 }
 0x1ae   : > { %v1582_v54 = vpop.f32.mrf.mxu3 }
 0x1af   : > { %v1438_v29 = vpop.f32.mrf.mxu2  ;;  %v1606_v53 = vadd.f32 %v1582_v54, %v1459_v11  ;;  %v1200_v15 = vpop.f32.mrf.mxu0 }
 0x1b0   : > { %v1460_v42 = vadd.f32 %v1438_v29, %v1308_v37  ;;  %v1313_v38 = vpop.f32.mrf.mxu1  ;;  %v2066_v37 = vld [vmem:[#allocation2 + $0xa8] sm:$0xff] }
 0x1b1   : > { %v1314_v62 = vadd.f32 %v1313_v38, %v1200_v15 }
 0x1b2   : > { %2769 = vmatmul.msk.f32.gmra.mxu0 %vm321_vm1, %v1625_v2 }
 0x1b3   : > { %2786 = vmatmul.msk.f32.gmra.mxu1 %vm321_vm1, %v3645_v5  ;;  %2818 = vmatmul.msk.f32.gmra.mxu3 %vm321_vm1, %v1625_v2 }
 0x1b4   : > { %2802 = vmatmul.msk.f32.gmra.mxu2 %vm321_vm1, %v1918_v51 }
 0x1b6   : > { %v1585_v27 = vpop.f32.mrf.mxu3 }
 0x1b7   : > { %v1441_v40 = vpop.f32.mrf.mxu2  ;;  %v1607_v48 = vadd.f32 %v1585_v27, %v1460_v42  ;;  %v3652_v14 = vpop.f32.mrf.mxu0 }
 0x1b8   : > { %v1461_v60 = vadd.f32 %v1441_v40, %v1311_v58  ;;  %v1840_v58 = vpop.f32.mrf.mxu1 }
 0x1ba   : > { %2822 = vmatmul.msk.f32.vlgmr.msrb.gmra.mxu0 %vm321_vm1, %v3261_v41 }
 0x1bb   : > { %2819 = vmatmul.msk.f32.gmra.mxu3 %vm321_vm1, %v2065_v45 }
 0x1bc   : > { %2803 = vmatmul.msk.f32.gmra.mxu2 %vm321_vm1, %v1919_v8 }
 0x1be   : > { %v1588_v35 = vpop.f32.mrf.mxu3 }
 0x1bf   : > { %v1444_v26 = vpop.f32.mrf.mxu2  ;;  %v1608_v52 = vadd.f32 %v1588_v35, %v1461_v60  ;;  %v1696_v43 = vpop.f32.mrf.mxu0 }
 0x1c0   : > { %v1462_v11 = vadd.f32 %v1444_v26, %v1314_v62 }
 0x1c2   : > { %2823 = vmatmul.msk.f32.gmra.mxu0 %vm321_vm1, %v3281_v55 }
 0x1c3   : > { %2820 = vmatmul.msk.f32.gmra.mxu3 %vm321_vm1, %v2066_v37 }
 0x1c6   : > { %v1591_v29 = vpop.f32.mrf.mxu3 }
 0x1c7   : > { %v1609_v54 = vadd.f32 %v1591_v29, %v1462_v11  ;;  %v3661_v42 = vpop.f32.mrf.mxu0 }
 0x1ca   : > { %2824 = vmatmul.msk.f32.gmra.mxu0 %vm321_vm1, %v3301_v18 }
 0x1cf   : > { %v3665_v41 = vpop.f32.mrf.mxu0 }
 0x1d2   : > { %2825 = vmatmul.msk.f32.gmra.mxu0 %vm321_vm1, %v3321_v36 }
 0x1d7   : > { %v3669_v15 = vpop.f32.mrf.mxu0 }
 0x1da   : > { %2826 = vmatmul.msk.f32.gmra.mxu0 %vm321_vm1, %v3341_v56 }
 0x1df   : > { %v3673_v55 = vpop.f32.mrf.mxu0 }
 0x1e2   : > { %2827 = vmatmul.msk.f32.gmra.mxu0 %vm321_vm1, %v3361_v22 }
 0x1e7   : > { %v3677_v20 = vpop.f32.mrf.mxu0 }
 0x1ea   : > { %2828 = vmatmul.msk.f32.gmra.mxu0 %vm321_vm1, %v3381_v47 }
 0x1ef   : > { %v3681_v18 = vpop.f32.mrf.mxu0 }
 0x1f2   : > { %2829 = vmatmul.msk.f32.gmra.mxu0 %vm321_vm1, %v3404_v10 }
 0x1f7   : > { %v1717_v36 = vpop.f32.mrf.mxu0 }
 0x1f8   : > { %v3686_v2 = vadd.f32 %v1717_v36, %v3605_v4 }
 0x1fa   : > { %2830 = vmatmul.msk.f32.gmra.mxu0 %vm321_vm1, %v3433_v6  ;;  %v1987_v6 = vpop.f32.mrf.mxu2 }
 0x1ff   : > { %v1720_v56 = vpop.f32.mrf.mxu0 }
 0x200   : > { %v3691_v22 = vadd.f32 %v1720_v56, %v3615_v21  ;;  %v2134_v21 = vpop.f32.mrf.mxu3  ;;  %v1742_v56 = vadd.f32 %v1696_v43, %v3535_v3  ;;  %v1743_v3 = vadd.f32 %v3661_v42, %v3545_v7 }
 0x202   : > { %2831 = vmatmul.msk.f32.gmra.mxu0 %vm321_vm1, %v3453_v16  ;;  %v1843_v16 = vpop.f32.mrf.mxu1 }
 0x207   : > { %v1723_v47 = vpop.f32.mrf.mxu0 }
 0x208   : > { %v3696_v51 = vadd.f32 %v1723_v47, %v3625_v12  ;;  %v1990_v12 = vpop.f32.mrf.mxu2  ;;  %v2137_v60 = vpop.f32.mrf.mxu3 }
 0x20a   : > { %2832 = vmatmul.msk.f32.gmra.mxu0 %vm321_vm1, %v3473_v63 }
 0x20f   : > { %v1726_v10 = vpop.f32.mrf.mxu0 }
 0x210   : > { %v3701_v4 = vadd.f32 %v1726_v10, %v3635_v34  ;;  %v1846_v34 = vpop.f32.mrf.mxu1  ;;  %v1993_v45 = vpop.f32.mrf.mxu2  ;;  %v1889_v10 = vadd.f32 %v1843_v16, %v1742_v56 }
 0x211   : > { %v2140_v26 = vpop.f32.mrf.mxu3 }
 0x212   : > { %2833 = vmatmul.msk.f32.gmra.mxu0 %vm321_vm1, %v3492_v13  ;;  %v1269_v13 = vadd.f32 %v3486_v49, %v3484_v17 }
 0x217   : > { %v1729_v40 = vpop.f32.mrf.mxu0 }
 0x218   : > { %v3705_v27 = vadd.f32 %v1729_v40, %v1606_v53  ;;  %v2212_v53 = vld [vmem:[#allocation2 + $0xa1] sm:$0xff]  ;;  %v1849_v37 = vpop.f32.mrf.mxu1  ;;  %v1996_v17 = vpop.f32.mrf.mxu2 }
 0x21a   : > { %2834 = vmatmul.msk.f32.gmra.mxu0 %vm321_vm1, %v3637_v24  ;;  %v1447_v24 = vadd.f32 %v3515_v50, %v1269_v13 }
 0x21f   : > { %v1732_v63 = vpop.f32.mrf.mxu0 }
 0x220   : > { %v3709_v8 = vadd.f32 %v1732_v63, %v1607_v48  ;;  %v1594_v48 = vadd.f32 %v3525_v28, %v1447_v24  ;;  %v3728_v28 = vld [vmem:[%s3834_s5] ss:$0 sm:$0xff]  ;;  %v1852_v40 = vpop.f32.mrf.mxu1  ;;  %v1999_v63 = vpop.f32.mrf.mxu2 }
 0x222   : > { %2835 = vmatmul.msk.f32.gmra.mxu0 %vm321_vm1, %v3645_v5  ;;  %v1741_v35 = vadd.f32 %v3652_v14, %v1594_v48  ;;  %v2213_v5 = vld [vmem:[#allocation2 + $0xa9] sm:$0xff] }
 0x224   : > { %v1888_v49 = vadd.f32 %v1840_v58, %v1741_v35  ;;  %v2036_v58 = vadd.f32 %v1990_v12, %v1889_v10  ;;  %v1744_v12 = vadd.f32 %v3665_v41, %v3555_v25 }
 0x226   : > { %v2035_v36 = vadd.f32 %v1987_v6, %v1888_v49  ;;  %v2183_v43 = vadd.f32 %v2137_v60, %v2036_v58 }
 0x227   : > { %v1735_v38 = vpop.f32.mrf.mxu0 }
 0x228   : > { %v3715_v62 = vadd.f32 %v1735_v38, %v1608_v52  ;;  %v2143_v52 = vpop.f32.mrf.mxu3  ;;  %v2182_v50 = vadd.f32 %v2134_v21, %v2035_v36  ;;  %v1855_v16 = vpop.f32.mrf.mxu1 }
 0x22a   : > { %2836 = vmatmul.msk.f32.gmra.mxu0 %vm321_vm1, %v2212_v53  ;;  %v1890_v53 = vadd.f32 %v1846_v34, %v1743_v3 }
 0x22c   : > { %v2037_v48 = vadd.f32 %v1993_v45, %v1890_v53 }
 0x22f   : > { %v1738_v11 = vpop.f32.mrf.mxu0 }
 0x230   : > { %v3721_v29 = vadd.f32 %v1738_v11, %v1609_v54  ;;  %v2146_v38 = vpop.f32.mrf.mxu3 }
 0x232   : > { %2837 = vmatmul.msk.f32.gmra.mxu0 %vm321_vm1, %v2213_v5  ;;  %v2184_v5 = vadd.f32 %v2140_v26, %v2037_v48 }
 0x237   : > { %v2281_v14 = vpop.f32.mrf.mxu0 }
 0x238   : > { %v2329_v47 = vadd.f32 %v2281_v14, %v2182_v50  ;;  %v2149_v60 = vpop.f32.mrf.mxu3  ;;  %v1891_v14 = vadd.f32 %v1849_v37, %v1744_v12 }
 0x23a   : > { %v2348_v54 = vadd.f32 %v3728_v28, %v2329_v47  ;;  %v2038_v41 = vadd.f32 %v1996_v17, %v1891_v14  ;;  %v1745_v47 = vadd.f32 %v3669_v15, %v3565_v39  ;;  %v1746_v15 = vadd.f32 %v3673_v55, %v3575_v9 }
 0x23b   : > { %v1747_v55 = vadd.f32 %v3677_v20, %v3585_v33  ;;  %v1748_v20 = vadd.f32 %v3681_v18, %v3595_v59 }
 0x23c   : > { %v2364_v13 = vmul.f32 %v2348_v54, %v3201_v32  ;;  %v2002_v32 = vpop.f32.mrf.mxu2  ;;  %v2185_v10 = vadd.f32 %v2143_v52, %v2038_v41  ;;  %v1858_v54 = vpop.f32.mrf.mxu1  ;;  %v1892_v17 = vadd.f32 %v1852_v40, %v1745_v47 }
 0x23e   : > { %2473 = vxpose.xlu1.b32.start [1/16] (narrow) %v2364_v13, 8  ;;  %v2419_v35 = vmul.f32 %v2364_v13, %v2364_v13  ;;  %v2380_v49 = vsel %vm321_vm1, %v2364_v13, 0.0  ;;  %v2039_v48 = vadd.f32 %v1999_v63, %v1892_v17 }
 0x23f   : > { %v2284_v6 = vpop.f32.mrf.mxu0 }
 0x240   : > { %v2330_v21 = vadd.f32 %v2284_v6, %v2183_v43  ;;  %v2435_v45 = vsel %vm321_vm1, %v2419_v35, 0.0  ;;  %v2152_v53 = vpop.f32.mrf.mxu3  ;;  %v2186_v52 = vadd.f32 %v2146_v38, %v2039_v48 }
 0x242   : > { %v2349_v24 = vadd.f32 %v3728_v28, %v2330_v21 }
 0x244   : > { %v2365_v11 = vmul.f32 %v2349_v24, %v3206_v44  ;;  %v2005_v3 = vpop.f32.mrf.mxu2 }
 0x246   : > { %v2381_v7 = vsel %vm321_vm1, %v2365_v11, 0.0  ;;  %v2420_v42 = vmul.f32 %v2365_v11, %v2365_v11  ;;  %2474 = vxpose.xlu1.b32.cont [2/16] (narrow) %v2365_v11, 8 }
 0x247   : > { %v2382_v34 = vadd.f32 %v2381_v7, %v2380_v49  ;;  %v2287_v36 = vpop.f32.mrf.mxu0  ;;  %v1861_v49 = vpop.f32.mrf.mxu1 }
 0x248   : > { %v2436_v56 = vsel %vm321_vm1, %v2420_v42, 0.0  ;;  %v2331_v50 = vadd.f32 %v2287_v36, %v2184_v5  ;;  %v1893_v36 = vadd.f32 %v1855_v16, %v1746_v15  ;;  %v1895_v17 = vadd.f32 %v1861_v49, %v1748_v20 }
 0x249   : > { %v2437_v44 = vadd.f32 %v2436_v56, %v2435_v45 }
 0x24a   : > { %v2350_v25 = vadd.f32 %v3728_v28, %v2331_v50  ;;  %v2040_v45 = vadd.f32 %v2002_v32, %v1893_v36 }
 0x24c   : > { %v2366_v26 = vmul.f32 %v2350_v25, %v3218_v57  ;;  %v2008_v40 = vpop.f32.mrf.mxu2  ;;  %v2187_v38 = vadd.f32 %v2149_v60, %v2040_v45 }
 0x24e   : > { %v2383_v58 = vsel %vm321_vm1, %v2366_v26, 0.0  ;;  %v2421_v13 = vmul.f32 %v2366_v26, %v2366_v26  ;;  %2475 = vxpose.xlu1.b32.cont [3/16] (narrow) %v2366_v26, 8  ;;  %v1894_v26 = vadd.f32 %v1858_v54, %v1747_v55 }
 0x24f   : > { %v2384_v43 = vadd.f32 %v2383_v58, %v2382_v34  ;;  %v2290_v6 = vpop.f32.mrf.mxu0  ;;  %v1864_v47 = vpop.f32.mrf.mxu1 }
 0x250   : > { %v2438_v21 = vsel %vm321_vm1, %v2421_v13, 0.0  ;;  %v2332_v37 = vadd.f32 %v2290_v6, %v2185_v10  ;;  %v1896_v49 = vadd.f32 %v1864_v47, %v3686_v2 }
 0x251   : > { %v2439_v24 = vadd.f32 %v2438_v21, %v2437_v44 }
 0x252   : > { %v2351_v57 = vadd.f32 %v3728_v28, %v2332_v37 }
 0x254   : > { %v2367_v39 = vmul.f32 %v2351_v57, %v3234_v19  ;;  %v2155_v19 = vpop.f32.mrf.mxu3  ;;  %v2011_v10 = vpop.f32.mrf.mxu2  ;;  %v2042_v57 = vadd.f32 %v2008_v40, %v1895_v17 }
 0x256   : > { %v2385_v35 = vsel %vm321_vm1, %v2367_v39, 0.0  ;;  %v2422_v11 = vmul.f32 %v2367_v39, %v2367_v39  ;;  %2476 = vxpose.xlu1.b32.cont [4/16] (narrow) %v2367_v39, 8  ;;  %v2189_v59 = vadd.f32 %v2155_v19, %v2042_v57 }
 0x257   : > { %v2386_v12 = vadd.f32 %v2385_v35, %v2384_v43  ;;  %v2293_v5 = vpop.f32.mrf.mxu0 }
 0x258   : > { %v2440_v7 = vsel %vm321_vm1, %v2422_v11, 0.0  ;;  %v2333_v42 = vadd.f32 %v2293_v5, %v2186_v52 }
 0x259   : > { %v2441_v34 = vadd.f32 %v2440_v7, %v2439_v24 }
 0x25a   : > { %v2352_v63 = vadd.f32 %v3728_v28, %v2333_v42  ;;  %v2043_v42 = vadd.f32 %v2011_v10, %v1896_v49 }
 0x25c   : > { %v2368_v9 = vmul.f32 %v2352_v63, %v3253_v30  ;;  %v2041_v30 = vadd.f32 %v2005_v3, %v1894_v26  ;;  %v2158_v33 = vpop.f32.mrf.mxu3  ;;  %v2014_v39 = vpop.f32.mrf.mxu2 }
 0x25e   : > { %v2387_v56 = vsel %vm321_vm1, %v2368_v9, 0.0  ;;  %v2423_v50 = vmul.f32 %v2368_v9, %v2368_v9  ;;  %2477 = vxpose.xlu1.b32.cont [5/16] (narrow) %v2368_v9, 8  ;;  %v2188_v60 = vadd.f32 %v2152_v53, %v2041_v30 }
 0x25f   : > { %v2388_v44 = vadd.f32 %v2387_v56, %v2386_v12  ;;  %v2296_v14 = vpop.f32.mrf.mxu0 }
 0x260   : > { %v2442_v25 = vsel %vm321_vm1, %v2423_v50, 0.0  ;;  %v2334_v41 = vadd.f32 %v2296_v14, %v2187_v38 }
 0x261   : > { %v2443_v16 = vadd.f32 %v2442_v25, %v2441_v34  ;;  %v2190_v34 = vadd.f32 %v2158_v33, %v2043_v42 }
 0x262   : > { %v2353_v32 = vadd.f32 %v3728_v28, %v2334_v41 }
 0x264   : > { %v2369_v58 = vmul.f32 %v2353_v32, %v3274_v46  ;;  %v1867_v46 = vpop.f32.mrf.mxu1  ;;  %v2161_v15 = vpop.f32.mrf.mxu3 }
 0x265   : > { %v2017_v19 = vpop.f32.mrf.mxu2  ;;  %v1897_v2 = vadd.f32 %v1867_v46, %v3691_v22 }
 0x266   : > { %v2389_v13 = vsel %vm321_vm1, %v2369_v58, 0.0  ;;  %v2424_v43 = vmul.f32 %v2369_v58, %v2369_v58  ;;  %2478 = vxpose.xlu1.b32.cont [6/16] (narrow) %v2369_v58, 8 }
 0x267   : > { %v2390_v6 = vadd.f32 %v2389_v13, %v2388_v44  ;;  %v2299_v21 = vpop.f32.mrf.mxu0  ;;  %v2044_v14 = vadd.f32 %v2014_v39, %v1897_v2 }
 0x268   : > { %v2444_v54 = vsel %vm321_vm1, %v2424_v43, 0.0  ;;  %v2335_v37 = vadd.f32 %v2299_v21, %v2188_v60 }
 0x269   : > { %v2445_v24 = vadd.f32 %v2444_v54, %v2443_v16  ;;  %v2191_v25 = vadd.f32 %v2161_v15, %v2044_v14 }
 0x26a   : > { %v2354_v3 = vadd.f32 %v3728_v28, %v2335_v37 }
 0x26c   : > { %v2370_v48 = vmul.f32 %v2354_v3, %v3294_v61  ;;  %v1870_v40 = vpop.f32.mrf.mxu1  ;;  %v2164_v56 = vpop.f32.mrf.mxu3 }
 0x26d   : > { %v2020_v58 = vpop.f32.mrf.mxu2  ;;  %v1898_v22 = vadd.f32 %v1870_v40, %v3696_v51 }
 0x26e   : > { %v2391_v18 = vsel %vm321_vm1, %v2370_v48, 0.0  ;;  %v2425_v53 = vmul.f32 %v2370_v48, %v2370_v48  ;;  %2479 = vxpose.xlu1.b32.cont [7/16] (narrow) %v2370_v48, 8 }
 0x26f   : > { %v2392_v52 = vadd.f32 %v2391_v18, %v2390_v6  ;;  %v2302_v35 = vpop.f32.mrf.mxu0  ;;  %v2045_v13 = vadd.f32 %v2017_v19, %v1898_v22 }
 0x270   : > { %v2446_v11 = vsel %vm321_vm1, %v2425_v53, 0.0  ;;  %v2336_v12 = vadd.f32 %v2302_v35, %v2189_v59 }
 0x271   : > { %v2447_v5 = vadd.f32 %v2446_v11, %v2445_v24  ;;  %v2192_v43 = vadd.f32 %v2164_v56, %v2045_v13 }
 0x272   : > { %v2355_v7 = vadd.f32 %v3728_v28, %v2336_v12 }
 0x274   : > { %v2371_v61 = vmul.f32 %v2355_v7, %v3314_v23  ;;  %v1873_v32 = vpop.f32.mrf.mxu1  ;;  %v2167_v60 = vpop.f32.mrf.mxu3 }
 0x275   : > { %v1899_v57 = vadd.f32 %v1873_v32, %v3701_v4  ;;  %v2023_v48 = vpop.f32.mrf.mxu2 }
 0x276   : > { %v2393_v36 = vsel %vm321_vm1, %v2371_v61, 0.0  ;;  %v2426_v63 = vmul.f32 %v2371_v61, %v2371_v61  ;;  %2480 = vxpose.xlu1.b32.cont [8/16] (narrow) %v2371_v61, 8  ;;  %v3848_v61 = vld [vmem:[#allocation3_spill] sm:$0xff] }
 0x277   : > { %v2394_v45 = vadd.f32 %v2393_v36, %v2392_v52  ;;  %v2305_v9 = vpop.f32.mrf.mxu0  ;;  %v2046_v39 = vadd.f32 %v2020_v58, %v1899_v57 }
 0x278   : > { %v2448_v55 = vsel %vm321_vm1, %v2426_v63, 0.0  ;;  %v2337_v38 = vadd.f32 %v2305_v9, %v2190_v34 }
 0x279   : > { %v2449_v50 = vadd.f32 %v2448_v55, %v2447_v5  ;;  %v2193_v18 = vadd.f32 %v2167_v60, %v2046_v39  ;;  %v3850_v60 = vld [vmem:[#allocation5_spill] sm:$0xff]  ;;  %v3851_v39 = vld [vmem:[#allocation6_spill] sm:$0xff] }
 0x27a   : > { %v2356_v44 = vadd.f32 %v3728_v28, %v2337_v38 }
 0x27c   : > { %v2372_v23 = vmul.f32 %v2356_v44, %v3334_v0  ;;  %v1876_v51 = vpop.f32.mrf.mxu1  ;;  %v2170_v59 = vpop.f32.mrf.mxu3  ;;  %v3849_v44 = vld [vmem:[#allocation4_spill] sm:$0xff] }
 0x27d   : > { %v1900_v4 = vadd.f32 %v1876_v51, %v3705_v27  ;;  %v2026_v40 = vpop.f32.mrf.mxu2 }
 0x27e   : > { %v2395_v41 = vsel %vm321_vm1, %v2372_v23, 0.0  ;;  %v2427_v16 = vmul.f32 %v2372_v23, %v2372_v23  ;;  %2481 = vxpose.xlu1.b32.cont [9/16] (narrow) %v2372_v23, 8 }
 0x27f   : > { %v2396_v26 = vadd.f32 %v2395_v41, %v2394_v45  ;;  %v2308_v47 = vpop.f32.mrf.mxu0  ;;  %v2047_v42 = vadd.f32 %v2023_v48, %v1900_v4 }
 0x280   : > { %v2450_v10 = vsel %vm321_vm1, %v2427_v16, 0.0  ;;  %v2338_v30 = vadd.f32 %v2308_v47, %v2191_v25 }
 0x281   : > { %v2451_v33 = vadd.f32 %v2450_v10, %v2449_v50  ;;  %v2194_v34 = vadd.f32 %v2170_v59, %v2047_v42 }
 0x282   : > { %v2357_v20 = vadd.f32 %v3728_v28, %v2338_v30 }
 0x284   : > { %v2373_v0 = vmul.f32 %v2357_v20, %v3354_v1  ;;  %v1879_v7 = vpop.f32.mrf.mxu1  ;;  %v2173_v19 = vpop.f32.mrf.mxu3 }
 0x285   : > { %v1901_v27 = vadd.f32 %v1879_v7, %v3709_v8 }
 0x286   : > { %v2397_v6 = vsel %vm321_vm1, %v2373_v0, 0.0  ;;  %v2428_v21 = vmul.f32 %v2373_v0, %v2373_v0  ;;  %2482 = vxpose.xlu1.b32.cont [10/16] (narrow) %v2373_v0, 8 }
 0x287   : > { %v2398_v54 = vadd.f32 %v2397_v6, %v2396_v26  ;;  %v2311_v37 = vpop.f32.mrf.mxu0  ;;  %v2048_v2 = vadd.f32 %v2026_v40, %v1901_v27  ;;  %v2029_v26 = vpop.f32.mrf.mxu2 }
 0x288   : > { %v2452_v24 = vsel %vm321_vm1, %v2428_v21, 0.0  ;;  %v2339_v17 = vadd.f32 %v2311_v37, %v2192_v43 }
 0x289   : > { %v2453_v3 = vadd.f32 %v2452_v24, %v2451_v33  ;;  %v2195_v25 = vadd.f32 %v2173_v19, %v2048_v2 }
 0x28a   : > { %v2358_v46 = vadd.f32 %v3728_v28, %v2339_v17 }
 0x28c   : > { %v2374_v1 = vmul.f32 %v2358_v46, %v3374_v31  ;;  %v1882_v23 = vpop.f32.mrf.mxu1  ;;  %v2176_v58 = vpop.f32.mrf.mxu3 }
 0x28d   : > { %v1902_v8 = vadd.f32 %v1882_v23, %v3715_v62 }
 0x28e   : > { %v2399_v53 = vsel %vm321_vm1, %v2374_v1, 0.0  ;;  %v2429_v15 = vmul.f32 %v2374_v1, %v2374_v1  ;;  %2483 = vxpose.xlu1.b32.cont [11/16] (narrow) %v2374_v1, 8 }
 0x28f   : > { %v2400_v52 = vadd.f32 %v2399_v53, %v2398_v54  ;;  %v2314_v35 = vpop.f32.mrf.mxu0  ;;  %v2049_v20 = vadd.f32 %v2029_v26, %v1902_v8 }
 0x290   : > { %v2454_v11 = vsel %vm321_vm1, %v2429_v15, 0.0  ;;  %v2340_v12 = vadd.f32 %v2314_v35, %v2193_v18 }
 0x291   : > { %v2455_v5 = vadd.f32 %v2454_v11, %v2453_v3  ;;  %v2196_v0 = vadd.f32 %v2176_v58, %v2049_v20  ;;  %v2032_v3 = vpop.f32.mrf.mxu2 }
 0x292   : > { %v2359_v49 = vadd.f32 %v3728_v28, %v2340_v12 }
 0x294   : > { %v2375_v31 = vmul.f32 %v2359_v49, %v3848_v61  ;;  %v1885_v17 = vpop.f32.mrf.mxu1  ;;  %v2179_v46 = vpop.f32.mrf.mxu3 }
 0x295   : > { %v1903_v62 = vadd.f32 %v1885_v17, %v3721_v29  ;;  %v3852_v29 = vld [vmem:[#allocation7_spill] sm:$0xff] }
 0x296   : > { %v2401_v36 = vsel %vm321_vm1, %v2375_v31, 0.0  ;;  %v2430_v63 = vmul.f32 %v2375_v31, %v2375_v31  ;;  %2484 = vxpose.xlu1.b32.cont [12/16] (narrow) %v2375_v31, 8 }
 0x297   : > { %v2402_v45 = vadd.f32 %v2401_v36, %v2400_v52  ;;  %v2317_v9 = vpop.f32.mrf.mxu0  ;;  %v2050_v48 = vadd.f32 %v2032_v3, %v1903_v62 }
 0x298   : > { %v2456_v55 = vsel %vm321_vm1, %v2430_v63, 0.0  ;;  %v2341_v38 = vadd.f32 %v2317_v9, %v2194_v34 }
 0x299   : > { %v2457_v56 = vadd.f32 %v2456_v55, %v2455_v5  ;;  %v2197_v59 = vadd.f32 %v2179_v46, %v2050_v48 }
 0x29a   : > { %v2360_v50 = vadd.f32 %v3728_v28, %v2341_v38 }
 0x29c   : > { %v2376_v14 = vmul.f32 %v2360_v50, %v3849_v44 }
 0x29e   : > { %v2403_v41 = vsel %vm321_vm1, %v2376_v14, 0.0  ;;  %v2431_v16 = vmul.f32 %v2376_v14, %v2376_v14  ;;  %2485 = vxpose.xlu1.b32.cont [13/16] (narrow) %v2376_v14, 8 }
 0x29f   : > { %v2404_v47 = vadd.f32 %v2403_v41, %v2402_v45  ;;  %v2320_v32 = vpop.f32.mrf.mxu0 }
 0x2a0   : > { %v2458_v10 = vsel %vm321_vm1, %v2431_v16, 0.0  ;;  %v2342_v30 = vadd.f32 %v2320_v32, %v2195_v25 }
 0x2a1   : > { %v2459_v33 = vadd.f32 %v2458_v10, %v2457_v56 }
 0x2a2   : > { %v2361_v22 = vadd.f32 %v3728_v28, %v2342_v30 }
 0x2a4   : > { %v2377_v13 = vmul.f32 %v2361_v22, %v3850_v60 }
 0x2a6   : > { %v2405_v43 = vsel %vm321_vm1, %v2377_v13, 0.0  ;;  %v2432_v6 = vmul.f32 %v2377_v13, %v2377_v13  ;;  %2486 = vxpose.xlu1.b32.cont [14/16] (narrow) %v2377_v13, 8 }
 0x2a7   : > { %v2406_v21 = vadd.f32 %v2405_v43, %v2404_v47  ;;  %v2323_v54 = vpop.f32.mrf.mxu0 }
 0x2a8   : > { %v2460_v37 = vsel %vm321_vm1, %v2432_v6, 0.0  ;;  %v2343_v24 = vadd.f32 %v2323_v54, %v2196_v0 }
 0x2a9   : > { %v2461_v57 = vadd.f32 %v2460_v37, %v2459_v33 }
 0x2aa   : > { %v2362_v51 = vadd.f32 %v3728_v28, %v2343_v24 }
 0x2ac   : > { %v2378_v1 = vmul.f32 %v2362_v51, %v3851_v39 }
 0x2ae   : > { %v2407_v18 = vsel %vm321_vm1, %v2378_v1, 0.0  ;;  %v2433_v53 = vmul.f32 %v2378_v1, %v2378_v1  ;;  %2487 = vxpose.xlu1.b32.cont [15/16] (narrow) %v2378_v1, 8 }
 0x2af   : > { %v2408_v15 = vadd.f32 %v2407_v18, %v2406_v21  ;;  %v2326_v52 = vpop.f32.mrf.mxu0 }
 0x2b0   : > { %v2462_v35 = vsel %vm321_vm1, %v2433_v53, 0.0  ;;  %v2344_v11 = vadd.f32 %v2326_v52, %v2197_v59 }
 0x2b1   : > { %v2463_v12 = vadd.f32 %v2462_v35, %v2461_v57 }
 0x2b2   : > { %v2363_v5 = vadd.f32 %v3728_v28, %v2344_v11 }
 0x2b4   : > { %v2379_v4 = vmul.f32 %v2363_v5, %v3852_v29 }
 0x2b6   : > { %v2409_v49 = vsel %vm321_vm1, %v2379_v4, 0.0  ;;  %v2434_v7 = vmul.f32 %v2379_v4, %v2379_v4  ;;  %2488 = vxpose.xlu1.b32.end [16/16] (narrow) %v2379_v4, 8 }
 0x2b7   : > { %v2410_v42 = vadd.f32 %v2409_v49, %v2408_v15 }
 0x2b8   : > { %v2464_v61 = vsel %vm321_vm1, %v2434_v7, 0.0 }
 0x2b9   : > { %v2411_v31 = vrot.slane %v2410_v42, 4  ;;  %v2465_v40 = vadd.f32 %v2464_v61, %v2463_v12 }
 0x2bb   : > { %v2412_v34 = vadd.f32 %v2411_v31, %v2410_v42  ;;  %v2466_v36 = vrot.slane %v2465_v40, 4 }
 0x2bd   : > { %v2413_v63 = vrot.slane %v2412_v34, 2  ;;  %v2467_v19 = vadd.f32 %v2466_v36, %v2465_v40 }
 0x2bf   : > { %v2414_v45 = vadd.f32 %v2413_v63, %v2412_v34  ;;  %v2468_v28 = vrot.slane %v2467_v19, 2 }
 0x2c1   : > { %v2415_v9 = vrot.slane %v2414_v45, 1  ;;  %v2469_v55 = vadd.f32 %v2468_v28, %v2467_v19 }
 0x2c3   : > { %v2416_v38 = vadd.f32 %v2415_v9, %v2414_v45  ;;  %v2470_v56 = vrot.slane %v2469_v55, 1 }
 0x2c5   : > { %2418 = vst.msk [vmem:[%s317_s24] sm:$0x1] %vm2417_vm2, %v2416_v38  ;;  %v2471_v27 = vadd.f32 %v2470_v56, %v2469_v55 }
 0x2c7   : > { %2472 = vst.msk [vmem:[%s320_s29] sm:$0x1] %vm2417_vm2, %v2471_v27 }
 0x2e2   : > { %v2489_v50 = vpop.trf.xlu1 }
 0x2e3   : > { %2505 = vst [vmem:[%s314_s11] sm:$0xff] %v2489_v50 }
 0x2e4 PF: > { %s19_s27 = sadd.s32 1, %s2868_s27  }
 0x2e5   : > { %p16_p4 = scmp.ge.s32.totalorder %s19_s27, 4  }
 0x2e7   :  { %18 = sbr.rel (!%p16_p4) target bundleno = 1 (0x1), region = 109 }

</bundles_post_ra>
